<compile_context>
chip_gen: v5e
topology: v5e:2x2
jax: 0.10.0
libtpu: 0.0.40
codegen_flags: <defaults>
</compile_context>

<pallas_src>
import functools

import jax
import jax.numpy as jnp
import numpy as np
from jax import lax
from jax.experimental import pallas as pl
from jax.experimental.pallas import tpu as pltpu


# --------------------------------------------------------------------------- #
# In-kernel layout helpers (only lane slices, leading-axis concat/stack and
# leading-dim reshapes -- the reshape/concat flavors Mosaic lowers reliably).
# Pixel enumeration inside the kernel is m = j*R + (b*H2 + i)  ("j-major").
# --------------------------------------------------------------------------- #
def _unfold_lanes(x, rows, groups, sub):
    """(rows, groups*sub) -> (groups*rows, sub); out[g*rows + r, :] = x[r, g*sub:(g+1)*sub]."""
    parts = [x[:, g * sub:(g + 1) * sub][None] for g in range(groups)]
    return jnp.concatenate(parts, axis=0).reshape(groups * rows, sub)


def _fold_lanes(x, rows, groups, sub):
    """(groups*rows, sub) -> (rows, groups*sub); inverse of _unfold_lanes."""
    del sub
    return jnp.concatenate(
        [x[g * rows:(g + 1) * rows, :] for g in range(groups)], axis=1)


# --------------------------------------------------------------------------- #
# Fused kernel: BN1+ReLU -> conv1(s2) -> (+x2) -> BN2+ReLU -> deconv2(s2) -> (+x1)
# --------------------------------------------------------------------------- #
def _sweetblock_kernel(x1f_ref, x2f_ref, w1c_ref, w2c_ref,
                       s1f_ref, b1f_ref, s2_ref, b2_ref,
                       r2f_ref, r1f_ref, *, H2, W2, C, Cm):
    f32 = jnp.float32
    bf16 = jnp.bfloat16
    R = x1f_ref.shape[0]          # Bt * H2 folded rows in this grid step
    WC = 2 * W2 * C               # lanes per full-resolution image row (W * C)
    M = R * W2                    # parity-space pixels in this step (Bt*H2*W2)
    C2, C4 = 2 * C, 4 * C

    x1f = x1f_ref[...]                                           # (R, 2*WC)

    # ---- BN1 + ReLU on the lane-dense folded layout ----
    y = jnp.maximum(x1f * s1f_ref[...] + b1f_ref[...], 0.0)

    # ---- in-register space-to-depth (parity) packing:
    #      y_par[m=(j,b,i)] = [y(2i,2j,:), y(2i,2j+1,:), y(2i+1,2j,:), y(2i+1,2j+1,:)]
    y_par = jnp.concatenate([_unfold_lanes(y[:, :WC], R, W2, C2),
                             _unfold_lanes(y[:, WC:], R, W2, C2)], axis=1)   # (M, 4C)

    m_idx = lax.broadcasted_iota(jnp.int32, (M, 1), 0)
    not_j0 = m_idx >= R                       # j > 0
    not_i0 = (m_idx % H2) != 0                # i > 0

    def shift_down(v, s):                     # out[m] = v[m - s] (zeros for m < s)
        pad = jnp.zeros((s, v.shape[1]), v.dtype)
        return jnp.concatenate([pad, v[:v.shape[0] - s]], axis=0)

    # shifted views with zero halo at top/left; masks also kill cross-image bleed
    y_l = jnp.where(not_j0, shift_down(y_par, R), 0.0)            # y(i  , j-1)
    y_u = jnp.where(not_i0, shift_down(y_par, 1), 0.0)            # y(i-1, j  )
    y_ul = jnp.where(not_j0 & not_i0, shift_down(y_par, R + 1), 0.0)  # y(i-1, j-1)

    # ---- conv1 (3x3, stride 2, pad 1) == ONE tap-merged matmul, K = 16*C ----
    ycat = jnp.concatenate([y_par, y_l, y_u, y_ul], axis=1).astype(bf16)     # (M, 16C)
    r1 = jnp.dot(ycat, w1c_ref[...], preferred_element_type=f32)             # (M, Cm)

    # ---- res1 = conv1(...) + x2, stored lane-folded ----
    r1f_ref[...] = _fold_lanes(r1, R, W2, Cm) + x2f_ref[...]

    # ---- BN2 + ReLU on the PRE-residual conv output (matches PyTorch ordering) ----
    z = jnp.maximum(r1 * s2_ref[...] + b2_ref[...], 0.0)                     # (M, Cm)

    not_jL = m_idx < (M - R)                  # j < W2-1
    not_iL = (m_idx % H2) != (H2 - 1)         # i < H2-1

    def shift_up(v, s):                       # out[m] = v[m + s] (zeros at the end)
        pad = jnp.zeros((s, v.shape[1]), v.dtype)
        return jnp.concatenate([v[s:], pad], axis=0)

    z_r = jnp.where(not_jL, shift_up(z, R), 0.0)                  # z(p  , q+1)
    z_d = jnp.where(not_iL, shift_up(z, 1), 0.0)                  # z(p+1, q  )
    z_dr = jnp.where(not_jL & not_iL, shift_up(z, R + 1), 0.0)    # z(p+1, q+1)

    # ---- deconv2 (3x3, stride 2, pad 1, out_pad 1) == ONE matmul, 4-phase shuffle ----
    zcat = jnp.concatenate([z, z_r, z_d, z_dr], axis=1).astype(bf16)         # (M, 4Cm)
    r2 = jnp.dot(zcat, w2c_ref[...], preferred_element_type=f32)             # (M, 4C)

    # ---- pixel-shuffle phases back to full-res folded rows, add residual x1 ----
    r2f = jnp.concatenate([_fold_lanes(r2[:, :C2], R, W2, C2),    # even full-res rows
                           _fold_lanes(r2[:, C2:], R, W2, C2)],   # odd full-res rows
                          axis=1)                                  # (R, 2*WC)
    r2f_ref[...] = r2f + x1f


# --------------------------------------------------------------------------- #
# pallas_call wrapper
# --------------------------------------------------------------------------- #
def _choose_bt(B, per_image_bytes, budget_bytes=512 * 1024):
    """Largest divisor of B whose per-step activation I/O fits the budget, preferring
    >= 2 grid steps (v7x has two TensorCores to feed)."""
    cap = max(1, budget_bytes // max(per_image_bytes, 1))
    divs = [d for d in range(1, B + 1) if B % d == 0 and d <= cap] or [1]
    multi = [d for d in divs if B // d >= 2]
    return max(multi) if multi else max(divs)


def _fused_pallas(x1f, x2f, w1c, w2c, s1f, b1f, s2, b2, *, H2, W2, C, Cm, Bt):
    BH2, L1 = x1f.shape
    L2 = x2f.shape[1]
    R = Bt * H2
    G = BH2 // R

    kernel = functools.partial(_sweetblock_kernel, H2=H2, W2=W2, C=C, Cm=Cm)

    big_spec = pl.BlockSpec((R, L1), lambda g: (g, 0))
    small_spec = pl.BlockSpec((R, L2), lambda g: (g, 0))

    def whole(a):
        shape = a.shape
        return pl.BlockSpec(shape, lambda g: (0,) * len(shape))

    m_tot = BH2 * W2
    flops = 2 * m_tot * (w1c.shape[0] * Cm + w2c.shape[0] * 4 * C)
    bytes_accessed = (4 * 2 * (x1f.size + x2f.size)              # f32 activations in+out
                      + 2 * (w1c.size + w2c.size)                # bf16 weights
                      + 4 * (s1f.size + b1f.size + s2.size + b2.size))
    cost = pl.CostEstimate(flops=flops, transcendentals=0,
                           bytes_accessed=bytes_accessed)

    return pl.pallas_call(
        kernel,
        out_shape=(jax.ShapeDtypeStruct((BH2, L1), jnp.float32),
                   jax.ShapeDtypeStruct((BH2, L2), jnp.float32)),
        grid=(G,),
        in_specs=[big_spec, small_spec,
                  whole(w1c), whole(w2c),
                  whole(s1f), whole(b1f), whole(s2), whole(b2)],
        out_specs=(big_spec, small_spec),
        compiler_params=pltpu.CompilerParams(
            dimension_semantics=("parallel",),
            vmem_limit_bytes=32 * 1024 * 1024),
        cost_estimate=cost,
    )(x1f, x2f, w1c, w2c, s1f, b1f, s2, b2)


@jax.jit
def _forward_impl(x1, x2, packed):
    B, H, W, C = x1.shape
    H2, W2 = H // 2, W // 2
    Cm = x2.shape[-1]

    # Pure metadata reshapes of contiguous row-major data -- no extra HBM passes.
    x1f = x1.reshape(B * H2, 2 * W * C)
    x2f = x2.reshape(B * H2, W2 * Cm)

    # BN1 scale/shift tiled to the folded lane order (channel-fastest, period C).
    s1f = jnp.tile(packed["scale1"], 2 * W).reshape(1, 2 * W * C)
    b1f = jnp.tile(packed["shift1"], 2 * W).reshape(1, 2 * W * C)

    per_image_bytes = 4 * 2 * (H * W * C + H2 * W2 * Cm)
    Bt = _choose_bt(B, per_image_bytes)
    if (Bt * H2) % 8 != 0 and Bt != B:
        Bt = B  # fall back to a full-dim block if rows are not sublane-aligned

    r2f, r1f = _fused_pallas(x1f, x2f, packed["w1"], packed["w2"],
                             s1f, b1f, packed["scale2"], packed["shift2"],
                             H2=H2, W2=W2, C=C, Cm=Cm, Bt=Bt)
    return r2f.reshape(B, H, W, C), r1f.reshape(B, H2, W2, Cm)


def sweetblock_forward(x1, x2, pred, packed):
    B, H, W, C = x1.shape
    assert H % 2 == 0 and W % 2 == 0 and H >= 4 and W >= 4, "kernel needs even H,W >= 4"
    res2, res1 = _forward_impl(x1, x2, packed)
    return res2, res1, pred


# --------------------------------------------------------------------------- #
# Parameter packing (done once, outside the hot path)
# --------------------------------------------------------------------------- #
def pack_params(params):
    w1 = params["w1_hwio"]          # (3,3,C,Cm)   conv1
    w2 = params["w2_hwio"]          # (3,3,Cm,C)   equivalent regular conv of deconv2
    C, Cm = w1.shape[2], w1.shape[3]
    z1 = jnp.zeros((C, Cm), w1.dtype)
    z2 = jnp.zeros((Cm, C), w2.dtype)

    # conv1 tap groups; rows of each block ordered by source parity (ee, eo, oe, oo).
    b0 = jnp.concatenate([w1[1, 1], w1[1, 2], w1[2, 1], w1[2, 2]], axis=0)   # y(i  , j  )
    bc = jnp.concatenate([z1,       w1[1, 0], z1,       w1[2, 0]], axis=0)   # y(i  , j-1)
    br = jnp.concatenate([z1,       z1,       w1[0, 1], w1[0, 2]], axis=0)   # y(i-1, j  )
    brc = jnp.concatenate([z1,      z1,       z1,       w1[0, 0]], axis=0)   # y(i-1, j-1)
    w1c = jnp.concatenate([b0, bc, br, brc], axis=0).astype(jnp.bfloat16)    # (16C, Cm)

    # deconv2 phase groups; columns ordered by output phase (ee, eo, oe, oo).
    d0 = jnp.concatenate([w2[1, 1], w2[1, 0], w2[0, 1], w2[0, 0]], axis=1)   # z(p  , q  )
    dc = jnp.concatenate([z2,       w2[1, 2], z2,       w2[0, 2]], axis=1)   # z(p  , q+1)
    dr = jnp.concatenate([z2,       z2,       w2[2, 1], w2[2, 0]], axis=1)   # z(p+1, q  )
    drc = jnp.concatenate([z2,      z2,       z2,       w2[2, 2]], axis=1)   # z(p+1, q+1)
    w2c = jnp.concatenate([d0, dc, dr, drc], axis=0).astype(jnp.bfloat16)    # (4Cm, 4C)

    return dict(
        w1=w1c, w2=w2c,
        scale1=params["scale1"], shift1=params["shift1"],
        scale2=params["scale2"].reshape(1, Cm),
        shift2=params["shift2"].reshape(1, Cm),
    )


# --------------------------------------------------------------------------- #
# Deterministic parameter init (matches nn.Module shapes; inference-mode BN)
# --------------------------------------------------------------------------- #
def init_params(key, depth, inter=1, eps=1e-5):
    C, Cm = depth, depth * inter
    ks = jax.random.split(key, 10)
    g1 = jax.random.uniform(ks[0], (C,), minval=0.5, maxval=1.5)
    b1 = 0.1 * jax.random.normal(ks[1], (C,))
    m1 = 0.1 * jax.random.normal(ks[2], (C,))
    v1 = jax.random.uniform(ks[3], (C,), minval=0.5, maxval=1.5)
    g2 = jax.random.uniform(ks[4], (Cm,), minval=0.5, maxval=1.5)
    b2 = 0.1 * jax.random.normal(ks[5], (Cm,))
    m2 = 0.1 * jax.random.normal(ks[6], (Cm,))
    v2 = jax.random.uniform(ks[7], (Cm,), minval=0.5, maxval=1.5)
    w1 = 0.1 * jax.random.normal(ks[8], (Cm, C, 3, 3))   # Conv2d weight (O,I,kh,kw)
    wt = 0.1 * jax.random.normal(ks[9], (Cm, C, 3, 3))   # ConvTranspose2d weight (I,O,kh,kw)

    scale1 = g1 / jnp.sqrt(v1 + eps)
    shift1 = b1 - m1 * scale1
    scale2 = g2 / jnp.sqrt(v2 + eps)
    shift2 = b2 - m2 * scale2

    w1_hwio = jnp.transpose(w1, (2, 3, 1, 0))                          # (3,3,C,Cm)
    # equivalent regular-conv weight of the transposed conv:
    #   W_conv[kh,kw,ci,co] = Wt[ci,co,2-kh,2-kw]
    w2_hwio = jnp.transpose(jnp.flip(wt, axis=(2, 3)), (2, 3, 0, 1))   # (3,3,Cm,C)

    return dict(scale1=scale1, shift1=shift1, scale2=scale2, shift2=shift2,
                w1_hwio=w1_hwio, w2_hwio=w2_hwio)


# --------------------------------------------------------------------------- #
# Pure-JAX reference (lax convolutions) for correctness check
# --------------------------------------------------------------------------- #
def reference_forward(x1, x2, params):
    C = x1.shape[-1]
    Cm = params["w1_hwio"].shape[-1]
    s1 = params["scale1"].reshape(1, 1, 1, C)
    h1 = params["shift1"].reshape(1, 1, 1, C)
    s2 = params["scale2"].reshape(1, 1, 1, Cm)
    h2 = params["shift2"].reshape(1, 1, 1, Cm)

    y = jnp.maximum(x1 * s1 + h1, 0.0)
    res1 = lax.conv_general_dilated(
        y, params["w1_hwio"], window_strides=(2, 2), padding=((1, 1), (1, 1)),
        dimension_numbers=("NHWC", "HWIO", "NHWC"),
        precision=lax.Precision.HIGHEST)
    z = jnp.maximum(res1 * s2 + h2, 0.0)
    res2 = lax.conv_general_dilated(
        z, params["w2_hwio"], window_strides=(1, 1), padding=((1, 2), (1, 2)),
        lhs_dilation=(2, 2), dimension_numbers=("NHWC", "HWIO", "NHWC"),
        precision=lax.Precision.HIGHEST)
    return res2 + x1, res1 + x2


# TODO(synk): classify>0 (aux classifier head) and downsize=True (DownSampleA/B/C)
# branches are not exercised by the default SweetBlock config and are omitted.
# TODO(synk): a transposed (spatial-on-lanes) formulation could further densify the
# Cm=4 matmul outputs; left out since the MXU has ample slack at these sizes.

if __name__ == "__main__":
    B, depth, H, W = 2, 4, 16, 16
    inter = 1
    key = jax.random.PRNGKey(0)
    kx1, kx2, kp = jax.random.split(key, 3)
    # layout: NHWC
    x1 = jax.random.normal(kx1, (B, H, W, depth), dtype=jnp.float32)
    x2 = jax.random.normal(kx2, (B, H // 2, W // 2, depth * inter), dtype=jnp.float32)
    params = init_params(kp, depth, inter)
    packed = pack_params(params)

    res2, res1, pred = sweetblock_forward(x1, x2, [], packed)
    jax.block_until_ready((res2, res1))

    ref2, ref1 = reference_forward(x1, x2, params)
    # bf16 matmul inputs (f32 accumulation) -> slightly looser tolerance than pure f32.
    np.testing.assert_allclose(np.asarray(res2), np.asarray(ref2), rtol=2e-2, atol=2e-2)
    np.testing.assert_allclose(np.asarray(res1), np.asarray(ref1), rtol=2e-2, atol=2e-2)

    print("KERNEL_OK")
</pallas_src>

<mosaic_0001>
module attributes {stable_mosaic.version = 11 : i64} {
  func.func @_sweetblock_kernel(%arg0: i32, %arg1: memref<8x128xf32, #tpu.memory_space<vmem>>, %arg2: memref<8x32xf32, #tpu.memory_space<vmem>>, %arg3: memref<64x4xbf16, #tpu.memory_space<vmem>>, %arg4: memref<16x16xbf16, #tpu.memory_space<vmem>>, %arg5: memref<1x128xf32, #tpu.memory_space<vmem>>, %arg6: memref<1x128xf32, #tpu.memory_space<vmem>>, %arg7: memref<1x4xf32, #tpu.memory_space<vmem>>, %arg8: memref<1x4xf32, #tpu.memory_space<vmem>>, %arg9: memref<8x128xf32, #tpu.memory_space<vmem>>, %arg10: memref<8x32xf32, #tpu.memory_space<vmem>>) attributes {dimension_semantics = [#tpu.dimension_semantics<parallel>], iteration_bounds = array<i64: 2>, scalar_prefetch = 0 : i64, scratch_operands = 0 : i64, tpu.core_type = #tpu.core_type<tc>, window_params = [{transform_indices = @transform_0, window_bounds = array<i64: 8, 128>}, {transform_indices = @transform_1, window_bounds = array<i64: 8, 32>}, {pipeline_mode = #tpu.pipeline_mode<synchronous>, transform_indices = @transform_2, window_bounds = array<i64: 64, 4>}, {pipeline_mode = #tpu.pipeline_mode<synchronous>, transform_indices = @transform_3, window_bounds = array<i64: 16, 16>}, {pipeline_mode = #tpu.pipeline_mode<synchronous>, transform_indices = @transform_4, window_bounds = array<i64: 1, 128>}, {pipeline_mode = #tpu.pipeline_mode<synchronous>, transform_indices = @transform_5, window_bounds = array<i64: 1, 128>}, {pipeline_mode = #tpu.pipeline_mode<synchronous>, transform_indices = @transform_6, window_bounds = array<i64: 1, 4>}, {pipeline_mode = #tpu.pipeline_mode<synchronous>, transform_indices = @transform_7, window_bounds = array<i64: 1, 4>}, {transform_indices = @transform_8, window_bounds = array<i64: 8, 128>}, {transform_indices = @transform_9, window_bounds = array<i64: 8, 32>}]} {
    %c0 = arith.constant 0 : index
    %c0_0 = arith.constant 0 : index
    %0 = vector.load %arg1[%c0, %c0_0] : memref<8x128xf32, #tpu.memory_space<vmem>>, vector<8x128xf32>
    %c0_1 = arith.constant 0 : index
    %c0_2 = arith.constant 0 : index
    %1 = vector.load %arg5[%c0_1, %c0_2] : memref<1x128xf32, #tpu.memory_space<vmem>>, vector<1x128xf32>
    %2 = vector.broadcast %1 : vector<1x128xf32> to vector<8x128xf32>
    %3 = arith.mulf %0, %2 : vector<8x128xf32>
    %c0_3 = arith.constant 0 : index
    %c0_4 = arith.constant 0 : index
    %4 = vector.load %arg6[%c0_3, %c0_4] : memref<1x128xf32, #tpu.memory_space<vmem>>, vector<1x128xf32>
    %5 = vector.broadcast %4 : vector<1x128xf32> to vector<8x128xf32>
    %6 = arith.addf %3, %5 : vector<8x128xf32>
    %cst = arith.constant 0.000000e+00 : f32
    %7 = vector.broadcast %cst : f32 to vector<8x128xf32>
    %8 = arith.maximumf %6, %7 : vector<8x128xf32>
    %9 = vector.extract_strided_slice %8 {offsets = [0, 0], sizes = [8, 64], strides = [1, 1]} : vector<8x128xf32> to vector<8x64xf32>
    %10 = vector.extract_strided_slice %9 {offsets = [0, 0], sizes = [8, 8], strides = [1, 1]} : vector<8x64xf32> to vector<8x8xf32>
    %11 = vector.shape_cast %10 : vector<8x8xf32> to vector<1x8x8xf32>
    %12 = vector.extract_strided_slice %9 {offsets = [0, 8], sizes = [8, 8], strides = [1, 1]} : vector<8x64xf32> to vector<8x8xf32>
    %13 = vector.shape_cast %12 : vector<8x8xf32> to vector<1x8x8xf32>
    %14 = vector.extract_strided_slice %9 {offsets = [0, 16], sizes = [8, 8], strides = [1, 1]} : vector<8x64xf32> to vector<8x8xf32>
    %15 = vector.shape_cast %14 : vector<8x8xf32> to vector<1x8x8xf32>
    %16 = vector.extract_strided_slice %9 {offsets = [0, 24], sizes = [8, 8], strides = [1, 1]} : vector<8x64xf32> to vector<8x8xf32>
    %17 = vector.shape_cast %16 : vector<8x8xf32> to vector<1x8x8xf32>
    %18 = vector.extract_strided_slice %9 {offsets = [0, 32], sizes = [8, 8], strides = [1, 1]} : vector<8x64xf32> to vector<8x8xf32>
    %19 = vector.shape_cast %18 : vector<8x8xf32> to vector<1x8x8xf32>
    %20 = vector.extract_strided_slice %9 {offsets = [0, 40], sizes = [8, 8], strides = [1, 1]} : vector<8x64xf32> to vector<8x8xf32>
    %21 = vector.shape_cast %20 : vector<8x8xf32> to vector<1x8x8xf32>
    %22 = vector.extract_strided_slice %9 {offsets = [0, 48], sizes = [8, 8], strides = [1, 1]} : vector<8x64xf32> to vector<8x8xf32>
    %23 = vector.shape_cast %22 : vector<8x8xf32> to vector<1x8x8xf32>
    %24 = vector.extract_strided_slice %9 {offsets = [0, 56], sizes = [8, 8], strides = [1, 1]} : vector<8x64xf32> to vector<8x8xf32>
    %25 = vector.shape_cast %24 : vector<8x8xf32> to vector<1x8x8xf32>
    %26 = tpu.concatenate %11, %13, %15, %17, %19, %21, %23, %25 in 0 : vector<1x8x8xf32>, vector<1x8x8xf32>, vector<1x8x8xf32>, vector<1x8x8xf32>, vector<1x8x8xf32>, vector<1x8x8xf32>, vector<1x8x8xf32>, vector<1x8x8xf32> -> vector<8x8x8xf32>
    %27 = vector.shape_cast %26 : vector<8x8x8xf32> to vector<64x8xf32>
    %28 = vector.extract_strided_slice %8 {offsets = [0, 64], sizes = [8, 64], strides = [1, 1]} : vector<8x128xf32> to vector<8x64xf32>
    %29 = vector.extract_strided_slice %28 {offsets = [0, 0], sizes = [8, 8], strides = [1, 1]} : vector<8x64xf32> to vector<8x8xf32>
    %30 = vector.shape_cast %29 : vector<8x8xf32> to vector<1x8x8xf32>
    %31 = vector.extract_strided_slice %28 {offsets = [0, 8], sizes = [8, 8], strides = [1, 1]} : vector<8x64xf32> to vector<8x8xf32>
    %32 = vector.shape_cast %31 : vector<8x8xf32> to vector<1x8x8xf32>
    %33 = vector.extract_strided_slice %28 {offsets = [0, 16], sizes = [8, 8], strides = [1, 1]} : vector<8x64xf32> to vector<8x8xf32>
    %34 = vector.shape_cast %33 : vector<8x8xf32> to vector<1x8x8xf32>
    %35 = vector.extract_strided_slice %28 {offsets = [0, 24], sizes = [8, 8], strides = [1, 1]} : vector<8x64xf32> to vector<8x8xf32>
    %36 = vector.shape_cast %35 : vector<8x8xf32> to vector<1x8x8xf32>
    %37 = vector.extract_strided_slice %28 {offsets = [0, 32], sizes = [8, 8], strides = [1, 1]} : vector<8x64xf32> to vector<8x8xf32>
    %38 = vector.shape_cast %37 : vector<8x8xf32> to vector<1x8x8xf32>
    %39 = vector.extract_strided_slice %28 {offsets = [0, 40], sizes = [8, 8], strides = [1, 1]} : vector<8x64xf32> to vector<8x8xf32>
    %40 = vector.shape_cast %39 : vector<8x8xf32> to vector<1x8x8xf32>
    %41 = vector.extract_strided_slice %28 {offsets = [0, 48], sizes = [8, 8], strides = [1, 1]} : vector<8x64xf32> to vector<8x8xf32>
    %42 = vector.shape_cast %41 : vector<8x8xf32> to vector<1x8x8xf32>
    %43 = vector.extract_strided_slice %28 {offsets = [0, 56], sizes = [8, 8], strides = [1, 1]} : vector<8x64xf32> to vector<8x8xf32>
    %44 = vector.shape_cast %43 : vector<8x8xf32> to vector<1x8x8xf32>
    %45 = tpu.concatenate %30, %32, %34, %36, %38, %40, %42, %44 in 0 : vector<1x8x8xf32>, vector<1x8x8xf32>, vector<1x8x8xf32>, vector<1x8x8xf32>, vector<1x8x8xf32>, vector<1x8x8xf32>, vector<1x8x8xf32>, vector<1x8x8xf32> -> vector<8x8x8xf32>
    %46 = vector.shape_cast %45 : vector<8x8x8xf32> to vector<64x8xf32>
    %47 = tpu.concatenate %27, %46 in 1 : vector<64x8xf32>, vector<64x8xf32> -> vector<64x16xf32>
    %48 = tpu.iota {dimensions = array<i32: 0>} : vector<64x1xi32>
    %c8_i32 = arith.constant 8 : i32
    %49 = vector.broadcast %c8_i32 : i32 to vector<64x1xi32>
    %50 = arith.cmpi sge, %48, %49 : vector<64x1xi32>
    %c8_i32_5 = arith.constant 8 : i32
    %c0_i32 = arith.constant 0 : i32
    %51 = arith.cmpi eq, %c8_i32_5, %c0_i32 : i32
    %c1_i32 = arith.constant 1 : i32
    %52 = arith.select %51, %c1_i32, %c8_i32_5 : i32
    %53 = vector.broadcast %52 : i32 to vector<64x1xi32>
    %54 = arith.remsi %48, %53 : vector<64x1xi32>
    %c0_i32_6 = arith.constant 0 : i32
    %55 = vector.broadcast %c0_i32_6 : i32 to vector<64x1xi32>
    %56 = arith.cmpi ne, %54, %55 : vector<64x1xi32>
    %c0_i32_7 = arith.constant 0 : i32
    %57 = vector.broadcast %c0_i32_7 : i32 to vector<64x1xi32>
    %58 = arith.cmpi slt, %54, %57 : vector<64x1xi32>
    %c0_i32_8 = arith.constant 0 : i32
    %59 = arith.cmpi slt, %52, %c0_i32_8 : i32
    %60 = vector.broadcast %59 : i1 to vector<64x1xi1>
    %61 = vector.broadcast %60 : vector<64x1xi1> to vector<64x1xi1>
    %62 = arith.xori %58, %61 : vector<64x1xi1>
    %63 = arith.andi %62, %56 : vector<64x1xi1>
    %64 = vector.broadcast %52 : i32 to vector<64x1xi32>
    %65 = arith.addi %54, %64 : vector<64x1xi32>
    %66 = arith.select %63, %65, %54 : vector<64x1xi1>, vector<64x1xi32>
    %c0_i32_9 = arith.constant 0 : i32
    %67 = vector.broadcast %c0_i32_9 : i32 to vector<64x1xi32>
    %68 = arith.cmpi ne, %66, %67 : vector<64x1xi32>
    %cst_10 = arith.constant 0.000000e+00 : f32
    %69 = vector.broadcast %cst_10 : f32 to vector<8x16xf32>
    %70 = vector.extract_strided_slice %47 {offsets = [0, 0], sizes = [56, 16], strides = [1, 1]} : vector<64x16xf32> to vector<56x16xf32>
    %71 = tpu.concatenate %69, %70 in 0 : vector<8x16xf32>, vector<56x16xf32> -> vector<64x16xf32>
    %cst_11 = arith.constant 0.000000e+00 : f32
    %72 = vector.shape_cast %50 : vector<64x1xi1> to vector<64x1xi1>
    %73 = vector.broadcast %72 : vector<64x1xi1> to vector<64x16xi1>
    %74 = vector.broadcast %cst_11 : f32 to vector<64x16xf32>
    %75 = arith.select %73, %71, %74 : vector<64x16xi1>, vector<64x16xf32>
    %cst_12 = arith.constant 0.000000e+00 : f32
    %76 = vector.broadcast %cst_12 : f32 to vector<1x16xf32>
    %77 = vector.extract_strided_slice %47 {offsets = [0, 0], sizes = [63, 16], strides = [1, 1]} : vector<64x16xf32> to vector<63x16xf32>
    %78 = tpu.concatenate %76, %77 in 0 : vector<1x16xf32>, vector<63x16xf32> -> vector<64x16xf32>
    %cst_13 = arith.constant 0.000000e+00 : f32
    %79 = vector.shape_cast %68 : vector<64x1xi1> to vector<64x1xi1>
    %80 = vector.broadcast %79 : vector<64x1xi1> to vector<64x16xi1>
    %81 = vector.broadcast %cst_13 : f32 to vector<64x16xf32>
    %82 = arith.select %80, %78, %81 : vector<64x16xi1>, vector<64x16xf32>
    %83 = arith.andi %50, %68 : vector<64x1xi1>
    %cst_14 = arith.constant 0.000000e+00 : f32
    %84 = vector.broadcast %cst_14 : f32 to vector<9x16xf32>
    %85 = vector.extract_strided_slice %47 {offsets = [0, 0], sizes = [55, 16], strides = [1, 1]} : vector<64x16xf32> to vector<55x16xf32>
    %86 = tpu.concatenate %84, %85 in 0 : vector<9x16xf32>, vector<55x16xf32> -> vector<64x16xf32>
    %cst_15 = arith.constant 0.000000e+00 : f32
    %87 = vector.shape_cast %83 : vector<64x1xi1> to vector<64x1xi1>
    %88 = vector.broadcast %87 : vector<64x1xi1> to vector<64x16xi1>
    %89 = vector.broadcast %cst_15 : f32 to vector<64x16xf32>
    %90 = arith.select %88, %86, %89 : vector<64x16xi1>, vector<64x16xf32>
    %91 = tpu.concatenate %47, %75, %82, %90 in 1 : vector<64x16xf32>, vector<64x16xf32>, vector<64x16xf32>, vector<64x16xf32> -> vector<64x64xf32>
    %92 = arith.truncf %91 : vector<64x64xf32> to vector<64x64xbf16>
    %c0_16 = arith.constant 0 : index
    %c0_17 = arith.constant 0 : index
    %93 = vector.load %arg3[%c0_16, %c0_17] : memref<64x4xbf16, #tpu.memory_space<vmem>>, vector<64x4xbf16>
    %cst_18 = arith.constant dense<0.000000e+00> : vector<64x4xf32>
    %94 = tpu.matmul %92, %93, %cst_18 {dimension_numbers = #tpu.dot_dimension_numbers<[1], [0], [0], [1], [0, 0, 1, 1], [], []>} : vector<64x64xbf16>, vector<64x4xbf16>, vector<64x4xf32> -> vector<64x4xf32>
    %95 = vector.extract_strided_slice %94 {offsets = [0, 0], sizes = [8, 4], strides = [1, 1]} : vector<64x4xf32> to vector<8x4xf32>
    %96 = vector.extract_strided_slice %94 {offsets = [8, 0], sizes = [8, 4], strides = [1, 1]} : vector<64x4xf32> to vector<8x4xf32>
    %97 = vector.extract_strided_slice %94 {offsets = [16, 0], sizes = [8, 4], strides = [1, 1]} : vector<64x4xf32> to vector<8x4xf32>
    %98 = vector.extract_strided_slice %94 {offsets = [24, 0], sizes = [8, 4], strides = [1, 1]} : vector<64x4xf32> to vector<8x4xf32>
    %99 = vector.extract_strided_slice %94 {offsets = [32, 0], sizes = [8, 4], strides = [1, 1]} : vector<64x4xf32> to vector<8x4xf32>
    %100 = vector.extract_strided_slice %94 {offsets = [40, 0], sizes = [8, 4], strides = [1, 1]} : vector<64x4xf32> to vector<8x4xf32>
    %101 = vector.extract_strided_slice %94 {offsets = [48, 0], sizes = [8, 4], strides = [1, 1]} : vector<64x4xf32> to vector<8x4xf32>
    %102 = vector.extract_strided_slice %94 {offsets = [56, 0], sizes = [8, 4], strides = [1, 1]} : vector<64x4xf32> to vector<8x4xf32>
    %103 = tpu.concatenate %95, %96, %97, %98, %99, %100, %101, %102 in 1 : vector<8x4xf32>, vector<8x4xf32>, vector<8x4xf32>, vector<8x4xf32>, vector<8x4xf32>, vector<8x4xf32>, vector<8x4xf32>, vector<8x4xf32> -> vector<8x32xf32>
    %c0_19 = arith.constant 0 : index
    %c0_20 = arith.constant 0 : index
    %104 = vector.load %arg2[%c0_19, %c0_20] : memref<8x32xf32, #tpu.memory_space<vmem>>, vector<8x32xf32>
    %105 = arith.addf %103, %104 : vector<8x32xf32>
    %c0_21 = arith.constant 0 : index
    %c0_22 = arith.constant 0 : index
    %106 = vector.load %arg10[%c0_21, %c0_22] : memref<8x32xf32, #tpu.memory_space<vmem>>, vector<8x32xf32>
    tpu.vector_store %arg10[%c0_21, %c0_22], %105 {strides = array<i32>} : memref<8x32xf32, #tpu.memory_space<vmem>>, vector<8x32xf32>,
    %c0_23 = arith.constant 0 : index
    %c0_24 = arith.constant 0 : index
    %107 = vector.load %arg7[%c0_23, %c0_24] : memref<1x4xf32, #tpu.memory_space<vmem>>, vector<1x4xf32>
    %108 = vector.broadcast %107 : vector<1x4xf32> to vector<64x4xf32>
    %109 = arith.mulf %94, %108 : vector<64x4xf32>
    %c0_25 = arith.constant 0 : index
    %c0_26 = arith.constant 0 : index
    %110 = vector.load %arg8[%c0_25, %c0_26] : memref<1x4xf32, #tpu.memory_space<vmem>>, vector<1x4xf32>
    %111 = vector.broadcast %110 : vector<1x4xf32> to vector<64x4xf32>
    %112 = arith.addf %109, %111 : vector<64x4xf32>
    %cst_27 = arith.constant 0.000000e+00 : f32
    %113 = vector.broadcast %cst_27 : f32 to vector<64x4xf32>
    %114 = arith.maximumf %112, %113 : vector<64x4xf32>
    %c56_i32 = arith.constant 56 : i32
    %115 = vector.broadcast %c56_i32 : i32 to vector<64x1xi32>
    %116 = arith.cmpi slt, %48, %115 : vector<64x1xi32>
    %c8_i32_28 = arith.constant 8 : i32
    %c0_i32_29 = arith.constant 0 : i32
    %117 = arith.cmpi eq, %c8_i32_28, %c0_i32_29 : i32
    %c1_i32_30 = arith.constant 1 : i32
    %118 = arith.select %117, %c1_i32_30, %c8_i32_28 : i32
    %119 = vector.broadcast %118 : i32 to vector<64x1xi32>
    %120 = arith.remsi %48, %119 : vector<64x1xi32>
    %c0_i32_31 = arith.constant 0 : i32
    %121 = vector.broadcast %c0_i32_31 : i32 to vector<64x1xi32>
    %122 = arith.cmpi ne, %120, %121 : vector<64x1xi32>
    %c0_i32_32 = arith.constant 0 : i32
    %123 = vector.broadcast %c0_i32_32 : i32 to vector<64x1xi32>
    %124 = arith.cmpi slt, %120, %123 : vector<64x1xi32>
    %c0_i32_33 = arith.constant 0 : i32
    %125 = arith.cmpi slt, %118, %c0_i32_33 : i32
    %126 = vector.broadcast %125 : i1 to vector<64x1xi1>
    %127 = vector.broadcast %126 : vector<64x1xi1> to vector<64x1xi1>
    %128 = arith.xori %124, %127 : vector<64x1xi1>
    %129 = arith.andi %128, %122 : vector<64x1xi1>
    %130 = vector.broadcast %118 : i32 to vector<64x1xi32>
    %131 = arith.addi %120, %130 : vector<64x1xi32>
    %132 = arith.select %129, %131, %120 : vector<64x1xi1>, vector<64x1xi32>
    %c7_i32 = arith.constant 7 : i32
    %133 = vector.broadcast %c7_i32 : i32 to vector<64x1xi32>
    %134 = arith.cmpi ne, %132, %133 : vector<64x1xi32>
    %cst_34 = arith.constant 0.000000e+00 : f32
    %135 = vector.broadcast %cst_34 : f32 to vector<8x4xf32>
    %136 = vector.extract_strided_slice %114 {offsets = [8, 0], sizes = [56, 4], strides = [1, 1]} : vector<64x4xf32> to vector<56x4xf32>
    %137 = tpu.concatenate %136, %135 in 0 : vector<56x4xf32>, vector<8x4xf32> -> vector<64x4xf32>
    %cst_35 = arith.constant 0.000000e+00 : f32
    %138 = vector.shape_cast %116 : vector<64x1xi1> to vector<64x1xi1>
    %139 = vector.broadcast %138 : vector<64x1xi1> to vector<64x4xi1>
    %140 = vector.broadcast %cst_35 : f32 to vector<64x4xf32>
    %141 = arith.select %139, %137, %140 : vector<64x4xi1>, vector<64x4xf32>
    %cst_36 = arith.constant 0.000000e+00 : f32
    %142 = vector.broadcast %cst_36 : f32 to vector<1x4xf32>
    %143 = vector.extract_strided_slice %114 {offsets = [1, 0], sizes = [63, 4], strides = [1, 1]} : vector<64x4xf32> to vector<63x4xf32>
    %144 = tpu.concatenate %143, %142 in 0 : vector<63x4xf32>, vector<1x4xf32> -> vector<64x4xf32>
    %cst_37 = arith.constant 0.000000e+00 : f32
    %145 = vector.shape_cast %134 : vector<64x1xi1> to vector<64x1xi1>
    %146 = vector.broadcast %145 : vector<64x1xi1> to vector<64x4xi1>
    %147 = vector.broadcast %cst_37 : f32 to vector<64x4xf32>
    %148 = arith.select %146, %144, %147 : vector<64x4xi1>, vector<64x4xf32>
    %149 = arith.andi %116, %134 : vector<64x1xi1>
    %cst_38 = arith.constant 0.000000e+00 : f32
    %150 = vector.broadcast %cst_38 : f32 to vector<9x4xf32>
    %151 = vector.extract_strided_slice %114 {offsets = [9, 0], sizes = [55, 4], strides = [1, 1]} : vector<64x4xf32> to vector<55x4xf32>
    %152 = tpu.concatenate %151, %150 in 0 : vector<55x4xf32>, vector<9x4xf32> -> vector<64x4xf32>
    %cst_39 = arith.constant 0.000000e+00 : f32
    %153 = vector.shape_cast %149 : vector<64x1xi1> to vector<64x1xi1>
    %154 = vector.broadcast %153 : vector<64x1xi1> to vector<64x4xi1>
    %155 = vector.broadcast %cst_39 : f32 to vector<64x4xf32>
    %156 = arith.select %154, %152, %155 : vector<64x4xi1>, vector<64x4xf32>
    %157 = tpu.concatenate %114, %141, %148, %156 in 1 : vector<64x4xf32>, vector<64x4xf32>, vector<64x4xf32>, vector<64x4xf32> -> vector<64x16xf32>
    %158 = arith.truncf %157 : vector<64x16xf32> to vector<64x16xbf16>
    %c0_40 = arith.constant 0 : index
    %c0_41 = arith.constant 0 : index
    %159 = vector.load %arg4[%c0_40, %c0_41] : memref<16x16xbf16, #tpu.memory_space<vmem>>, vector<16x16xbf16>
    %cst_42 = arith.constant dense<0.000000e+00> : vector<64x16xf32>
    %160 = tpu.matmul %158, %159, %cst_42 {dimension_numbers = #tpu.dot_dimension_numbers<[1], [0], [0], [1], [0, 0, 1, 1], [], []>} : vector<64x16xbf16>, vector<16x16xbf16>, vector<64x16xf32> -> vector<64x16xf32>
    %161 = vector.extract_strided_slice %160 {offsets = [0, 0], sizes = [64, 8], strides = [1, 1]} : vector<64x16xf32> to vector<64x8xf32>
    %162 = vector.extract_strided_slice %161 {offsets = [0, 0], sizes = [8, 8], strides = [1, 1]} : vector<64x8xf32> to vector<8x8xf32>
    %163 = vector.extract_strided_slice %161 {offsets = [8, 0], sizes = [8, 8], strides = [1, 1]} : vector<64x8xf32> to vector<8x8xf32>
    %164 = vector.extract_strided_slice %161 {offsets = [16, 0], sizes = [8, 8], strides = [1, 1]} : vector<64x8xf32> to vector<8x8xf32>
    %165 = vector.extract_strided_slice %161 {offsets = [24, 0], sizes = [8, 8], strides = [1, 1]} : vector<64x8xf32> to vector<8x8xf32>
    %166 = vector.extract_strided_slice %161 {offsets = [32, 0], sizes = [8, 8], strides = [1, 1]} : vector<64x8xf32> to vector<8x8xf32>
    %167 = vector.extract_strided_slice %161 {offsets = [40, 0], sizes = [8, 8], strides = [1, 1]} : vector<64x8xf32> to vector<8x8xf32>
    %168 = vector.extract_strided_slice %161 {offsets = [48, 0], sizes = [8, 8], strides = [1, 1]} : vector<64x8xf32> to vector<8x8xf32>
    %169 = vector.extract_strided_slice %161 {offsets = [56, 0], sizes = [8, 8], strides = [1, 1]} : vector<64x8xf32> to vector<8x8xf32>
    %170 = tpu.concatenate %162, %163, %164, %165, %166, %167, %168, %169 in 1 : vector<8x8xf32>, vector<8x8xf32>, vector<8x8xf32>, vector<8x8xf32>, vector<8x8xf32>, vector<8x8xf32>, vector<8x8xf32>, vector<8x8xf32> -> vector<8x64xf32>
    %171 = vector.extract_strided_slice %160 {offsets = [0, 8], sizes = [64, 8], strides = [1, 1]} : vector<64x16xf32> to vector<64x8xf32>
    %172 = vector.extract_strided_slice %171 {offsets = [0, 0], sizes = [8, 8], strides = [1, 1]} : vector<64x8xf32> to vector<8x8xf32>
    %173 = vector.extract_strided_slice %171 {offsets = [8, 0], sizes = [8, 8], strides = [1, 1]} : vector<64x8xf32> to vector<8x8xf32>
    %174 = vector.extract_strided_slice %171 {offsets = [16, 0], sizes = [8, 8], strides = [1, 1]} : vector<64x8xf32> to vector<8x8xf32>
    %175 = vector.extract_strided_slice %171 {offsets = [24, 0], sizes = [8, 8], strides = [1, 1]} : vector<64x8xf32> to vector<8x8xf32>
    %176 = vector.extract_strided_slice %171 {offsets = [32, 0], sizes = [8, 8], strides = [1, 1]} : vector<64x8xf32> to vector<8x8xf32>
    %177 = vector.extract_strided_slice %171 {offsets = [40, 0], sizes = [8, 8], strides = [1, 1]} : vector<64x8xf32> to vector<8x8xf32>
    %178 = vector.extract_strided_slice %171 {offsets = [48, 0], sizes = [8, 8], strides = [1, 1]} : vector<64x8xf32> to vector<8x8xf32>
    %179 = vector.extract_strided_slice %171 {offsets = [56, 0], sizes = [8, 8], strides = [1, 1]} : vector<64x8xf32> to vector<8x8xf32>
    %180 = tpu.concatenate %172, %173, %174, %175, %176, %177, %178, %179 in 1 : vector<8x8xf32>, vector<8x8xf32>, vector<8x8xf32>, vector<8x8xf32>, vector<8x8xf32>, vector<8x8xf32>, vector<8x8xf32>, vector<8x8xf32> -> vector<8x64xf32>
    %181 = tpu.concatenate %170, %180 in 1 : vector<8x64xf32>, vector<8x64xf32> -> vector<8x128xf32>
    %182 = arith.addf %181, %0 : vector<8x128xf32>
    %c0_43 = arith.constant 0 : index
    %c0_44 = arith.constant 0 : index
    %183 = vector.load %arg9[%c0_43, %c0_44] : memref<8x128xf32, #tpu.memory_space<vmem>>, vector<8x128xf32>
    tpu.vector_store %arg9[%c0_43, %c0_44], %182 {strides = array<i32>} : memref<8x128xf32, #tpu.memory_space<vmem>>, vector<8x128xf32>,
    return
  }
  func.func @transform_0(%arg0: i32) -> (i32, i32) {
    %c0_i32 = arith.constant 0 : i32
    %c0_i32_0 = arith.constant 0 : i32
    return %arg0, %c0_i32 : i32, i32
  }
  func.func @transform_1(%arg0: i32) -> (i32, i32) {
    %c0_i32 = arith.constant 0 : i32
    %c0_i32_0 = arith.constant 0 : i32
    return %arg0, %c0_i32 : i32, i32
  }
  func.func @transform_2(%arg0: i32) -> (i32, i32) {
    %c0_i32 = arith.constant 0 : i32
    %c0_i32_0 = arith.constant 0 : i32
    %c0_i32_1 = arith.constant 0 : i32
    return %c0_i32, %c0_i32_0 : i32, i32
  }
  func.func @transform_3(%arg0: i32) -> (i32, i32) {
    %c0_i32 = arith.constant 0 : i32
    %c0_i32_0 = arith.constant 0 : i32
    %c0_i32_1 = arith.constant 0 : i32
    return %c0_i32, %c0_i32_0 : i32, i32
  }
  func.func @transform_4(%arg0: i32) -> (i32, i32) {
    %c0_i32 = arith.constant 0 : i32
    %c0_i32_0 = arith.constant 0 : i32
    %c0_i32_1 = arith.constant 0 : i32
    return %c0_i32, %c0_i32_0 : i32, i32
  }
  func.func @transform_5(%arg0: i32) -> (i32, i32) {
    %c0_i32 = arith.constant 0 : i32
    %c0_i32_0 = arith.constant 0 : i32
    %c0_i32_1 = arith.constant 0 : i32
    return %c0_i32, %c0_i32_0 : i32, i32
  }
  func.func @transform_6(%arg0: i32) -> (i32, i32) {
    %c0_i32 = arith.constant 0 : i32
    %c0_i32_0 = arith.constant 0 : i32
    %c0_i32_1 = arith.constant 0 : i32
    return %c0_i32, %c0_i32_0 : i32, i32
  }
  func.func @transform_7(%arg0: i32) -> (i32, i32) {
    %c0_i32 = arith.constant 0 : i32
    %c0_i32_0 = arith.constant 0 : i32
    %c0_i32_1 = arith.constant 0 : i32
    return %c0_i32, %c0_i32_0 : i32, i32
  }
  func.func @transform_8(%arg0: i32) -> (i32, i32) {
    %c0_i32 = arith.constant 0 : i32
    %c0_i32_0 = arith.constant 0 : i32
    return %arg0, %c0_i32 : i32, i32
  }
  func.func @transform_9(%arg0: i32) -> (i32, i32) {
    %c0_i32 = arith.constant 0 : i32
    %c0_i32_0 = arith.constant 0 : i32
    return %arg0, %c0_i32 : i32, i32
  }
}

</mosaic_0001>

<bundles_post_ra>
// kernel: tile.14
= control target key start
LH: loop header
LB: loop body
LE: loop exit
PB: predicated region body
PF: predicated region fallthrough
CT: control target
= control target key end

     0   :  { %s259_s10 = smov 124   ;;  %s260_s11 = smov 116   ;;  %vm3_vm0 = vcmask 31744   ;;  %vm9_vm1 = vcmask 1048544   ;;  %vm15_vm2 = vcmask 1015744   ;;  %vm21_vm3 = vcmask 982944   ;;  %s399_s0 = inlined_call_operand.vmem [shape: f32[32,4], index: 0, kind: input, shape index: {}]   ;;  %s400_s1 = inlined_call_operand.vmem [shape: f32[1,128], index: 1, kind: output, shape index: {}]  }
   0x1   :  { %v197_v0 = vld [vmem:[%s399_s0 + $0x1f] sm:$0x1]   ;;  %v199_v1 = vld [vmem:[%s399_s0 + $0x1d] sm:$0x1]   ;;  %v201_v2 = vld [vmem:[%s399_s0 + $0x1b] sm:$0x1]  }
   0x2   :  { %7 = vrot.lane.b32.xlu0 %v197_v0, %s259_s10  ;;  %19 = vrot.lane.b32.xlu1 %v199_v1, %s260_s11  ;;  %s261_s14 = smov 108   ;;  %v198_v3 = vld [vmem:[%s399_s0 + $0x1e] sm:$0x1]   ;;  %v200_v4 = vld [vmem:[%s399_s0 + $0x1c] sm:$0x1]   ;;  %s262_s19 = smov 120  }
   0x3   :  { %31 = vrot.lane.b32.xlu2 %v201_v2, %s261_s14  ;;  %s263_s20 = smov 112   ;;  %v202_v5 = vld [vmem:[%s399_s0 + $0x1a] sm:$0x1]   ;;  %s264_s23 = smov 104   ;;  %v203_v6 = vld [vmem:[%s399_s0 + $0x19] sm:$0x1]  }
   0x4   :  { %v204_v7 = vld [vmem:[%s399_s0 + $0x18] sm:$0x1]   ;;  %s265_s28 = smov 100   ;;  %s266_s29 = smov 96   ;;  %v205_v8 = vld [vmem:[%s399_s0 + $0x17] sm:$0x1]  }
   0x5   :  { %s267_s3 = smov 92   ;;  %v206_v9 = vld [vmem:[%s399_s0 + $0x16] sm:$0x1]   ;;  %v207_v10 = vld [vmem:[%s399_s0 + $0x15] sm:$0x1]   ;;  %s268_s8 = smov 88  }
   0x6   :  { %s269_s9 = smov 84   ;;  %v208_v11 = vld [vmem:[%s399_s0 + $0x14] sm:$0x1]   ;;  %s270_s12 = smov 80   ;;  %v209_v12 = vld [vmem:[%s399_s0 + $0x13] sm:$0x1]  }
   0x7   :  { %v210_v13 = vld [vmem:[%s399_s0 + $0x12] sm:$0x1]   ;;  %s271_s17 = smov 76   ;;  %s272_s18 = smov 72   ;;  %v211_v14 = vld [vmem:[%s399_s0 + $0x11] sm:$0x1]  }
   0x8   :  { %s273_s21 = smov 68   ;;  %v212_v15 = vld [vmem:[%s399_s0 + $0x10] sm:$0x1]   ;;  %v213_v16 = vld [vmem:[%s399_s0 + $0xf] sm:$0x1]   ;;  %s274_s26 = smov 64  }
   0x9   :  { %s275_s27 = smov 60   ;;  %v214_v17 = vld [vmem:[%s399_s0 + $0xe] sm:$0x1]   ;;  %s276_s30 = smov 56   ;;  %v215_v18 = vld [vmem:[%s399_s0 + $0xd] sm:$0x1]  }
   0xa   :  { %13 = vrot.lane.b32.xlu0 %v198_v3, %s262_s19  ;;  %25 = vrot.lane.b32.xlu1 %v200_v4, %s263_s20  ;;  %v216_v19 = vld [vmem:[%s399_s0 + $0xc] sm:$0x1]   ;;  %s277_s6 = smov 52   ;;  %s278_s7 = smov 48   ;;  %v217_v20 = vld [vmem:[%s399_s0 + $0xb] sm:$0x1]  }
   0xb   :  { %37 = vrot.lane.b32.xlu2 %v202_v5, %s264_s23  ;;  %s279_s10 = smov 44   ;;  %v218_v21 = vld [vmem:[%s399_s0 + $0xa] sm:$0x1]   ;;  %v219_v22 = vld [vmem:[%s399_s0 + $0x9] sm:$0x1]   ;;  %s280_s15 = smov 40  }
   0xc   :  { %s281_s16 = smov 36   ;;  %v220_v23 = vld [vmem:[%s399_s0 + $0x8] sm:$0x1]   ;;  %s282_s19 = smov 32   ;;  %v221_v24 = vld [vmem:[%s399_s0 + $0x7] sm:$0x1]  }
   0xd   :  { %v222_v25 = vld [vmem:[%s399_s0 + $0x6] sm:$0x1]   ;;  %s283_s24 = smov 28   ;;  %s284_s25 = smov 24   ;;  %v223_v26 = vld [vmem:[%s399_s0 + $0x5] sm:$0x1]  }
   0xe   :  { %v224_v27 = vld [vmem:[%s399_s0 + $0x4] sm:$0x1]   ;;  %v225_v28 = vld [vmem:[%s399_s0 + $0x3] sm:$0x1]   ;;  %s286_s4 = smov 16   ;;  %s287_s5 = smov 12  }
   0xf   :  { %v226_v29 = vld [vmem:[%s399_s0 + $0x2] sm:$0x1]   ;;  %v227_v30 = vld [vmem:[%s399_s0 + $0x1] sm:$0x1]   ;;  %s289_s11 = smov 4   ;;  %vm27_vm4 = vcmask 950144  }
  0x10   :  { %v2_v31 = vld [vmem:[%s399_s0] sm:$0x1]   ;;  %vm33_vm5 = vcmask 917344   ;;  %vm39_vm6 = vcmask 884544   ;;  %vm45_vm7 = vcmask 851744   ;;  %vm51_vm8 = vcmask 818944  }
  0x11   :  { %4 = vst.msk [vmem:[#allocation0] sm:$0x1] %vm3_vm0, %v2_v31   ;;  %vm57_vm9 = vcmask 786144   ;;  %vm63_vm10 = vcmask 753344   ;;  %vm69_vm11 = vcmask 720544   ;;  %vm75_vm12 = vcmask 687744  }
  0x12   :  { %43 = vrot.lane.b32.xlu0 %v203_v6, %s265_s28  ;;  %49 = vrot.lane.b32.xlu1 %v204_v7, %s266_s29  ;;  %s285_s28 = smov 20   ;;  %vm81_vm13 = vcmask 654944   ;;  %vm87_vm14 = vcmask 622144   ;;  %vm93_vm15 = vcmask 589344   ;;  %vm99_vm0 = vcmask 556544  }
  0x13   :  { %55 = vrot.lane.b32.xlu2 %v205_v8, %s267_s3 }
  0x1a   :  { %61 = vrot.lane.b32.xlu0 %v206_v9, %s268_s8  ;;  %67 = vrot.lane.b32.xlu1 %v207_v10, %s269_s9  ;;  %s288_s8 = smov 8  }
  0x1b   :  { %73 = vrot.lane.b32.xlu2 %v208_v11, %s270_s12 }
  0x22   :  { %79 = vrot.lane.b32.xlu0 %v209_v12, %s271_s17  ;;  %85 = vrot.lane.b32.xlu1 %v210_v13, %s272_s18 }
  0x23   :  { %91 = vrot.lane.b32.xlu2 %v211_v14, %s273_s21 }
  0x2a   :  { %97 = vrot.lane.b32.xlu0 %v212_v15, %s274_s26  ;;  %103 = vrot.lane.b32.xlu1 %v213_v16, %s275_s27 }
  0x2b   :  { %109 = vrot.lane.b32.xlu2 %v214_v17, %s276_s30 }
  0x32   :  { %115 = vrot.lane.b32.xlu0 %v215_v18, %s277_s6  ;;  %121 = vrot.lane.b32.xlu1 %v216_v19, %s278_s7 }
  0x33   :  { %127 = vrot.lane.b32.xlu2 %v217_v20, %s279_s10 }
  0x3a   :  { %133 = vrot.lane.b32.xlu0 %v218_v21, %s280_s15  ;;  %139 = vrot.lane.b32.xlu1 %v219_v22, %s281_s16 }
  0x3b   :  { %145 = vrot.lane.b32.xlu2 %v220_v23, %s282_s19 }
  0x42   :  { %151 = vrot.lane.b32.xlu0 %v221_v24, %s283_s24  ;;  %157 = vrot.lane.b32.xlu1 %v222_v25, %s284_s25 }
  0x43   :  { %163 = vrot.lane.b32.xlu2 %v223_v26, %s285_s28 }
  0x4a   :  { %169 = vrot.lane.b32.xlu0 %v224_v27, %s286_s4  ;;  %175 = vrot.lane.b32.xlu1 %v225_v28, %s287_s5 }
  0x4b   :  { %181 = vrot.lane.b32.xlu2 %v226_v29, %s288_s8 }
  0x52   :  { %187 = vrot.lane.b32.xlu0 %v227_v30, %s289_s11 }
  0x5d   :  { %v32_v32 = vpop.permute.xlu2 %31  }
  0x65   :  { %v38_v33 = vpop.permute.xlu2 %37  }
  0x6d   :  { %v56_v34 = vpop.permute.xlu2 %55  }
  0x74   :  { %v8_v35 = vpop.permute.xlu0 %7   ;;  %v20_v36 = vpop.permute.xlu1 %19  }
  0x75   :  { %10 = vst.msk [vmem:[#allocation0] sm:$0x1] %vm9_vm1, %v8_v35   ;;  %v74_v37 = vpop.permute.xlu2 %73   ;;  %vm105_vm1 = vcmask 523744  }
  0x7c   :  { %v14_v38 = vpop.permute.xlu0 %13   ;;  %v26_v39 = vpop.permute.xlu1 %25  }
  0x7d   :  { %16 = vst.msk [vmem:[#allocation0] sm:$0x1] %vm15_vm2, %v14_v38   ;;  %v92_v40 = vpop.permute.xlu2 %91   ;;  %vm111_vm2 = vcmask 490944  }
  0x7e   :  { %22 = vst.msk [vmem:[#allocation0] sm:$0x1] %vm21_vm3, %v20_v36   ;;  %vm117_vm3 = vcmask 458144  }
  0x7f   :  { %28 = vst.msk [vmem:[#allocation0] sm:$0x1] %vm27_vm4, %v26_v39   ;;  %vm123_vm4 = vcmask 425344  }
  0x80   :  { %34 = vst.msk [vmem:[#allocation0] sm:$0x1] %vm33_vm5, %v32_v32   ;;  %vm129_vm5 = vcmask 392544  }
  0x81   :  { %40 = vst.msk [vmem:[#allocation0] sm:$0x1] %vm39_vm6, %v38_v33   ;;  %vm135_vm6 = vcmask 359744  }
  0x84   :  { %v44_v41 = vpop.permute.xlu0 %43   ;;  %v50_v42 = vpop.permute.xlu1 %49  }
  0x85   :  { %46 = vst.msk [vmem:[#allocation0] sm:$0x1] %vm45_vm7, %v44_v41   ;;  %v110_v43 = vpop.permute.xlu2 %109   ;;  %vm141_vm7 = vcmask 326944  }
  0x86   :  { %52 = vst.msk [vmem:[#allocation0] sm:$0x1] %vm51_vm8, %v50_v42   ;;  %vm147_vm8 = vcmask 294144  }
  0x87   :  { %58 = vst.msk [vmem:[#allocation0] sm:$0x1] %vm57_vm9, %v56_v34   ;;  %vm153_vm9 = vcmask 261344  }
  0x8c   :  { %v62_v44 = vpop.permute.xlu0 %61   ;;  %v68_v45 = vpop.permute.xlu1 %67  }
  0x8d   :  { %64 = vst.msk [vmem:[#allocation0] sm:$0x1] %vm63_vm10, %v62_v44   ;;  %v128_v46 = vpop.permute.xlu2 %127   ;;  %vm159_vm10 = vcmask 228544  }
  0x8e   :  { %70 = vst.msk [vmem:[#allocation0] sm:$0x1] %vm69_vm11, %v68_v45   ;;  %vm165_vm11 = vcmask 195744  }
  0x8f   :  { %76 = vst.msk [vmem:[#allocation0] sm:$0x1] %vm75_vm12, %v74_v37   ;;  %vm171_vm12 = vcmask 162944  }
  0x94   :  { %v80_v47 = vpop.permute.xlu0 %79   ;;  %v86_v48 = vpop.permute.xlu1 %85  }
  0x95   :  { %82 = vst.msk [vmem:[#allocation0] sm:$0x1] %vm81_vm13, %v80_v47   ;;  %v146_v49 = vpop.permute.xlu2 %145   ;;  %vm177_vm13 = vcmask 130144  }
  0x96   :  { %88 = vst.msk [vmem:[#allocation0] sm:$0x1] %vm87_vm14, %v86_v48   ;;  %vm183_vm14 = vcmask 97344  }
  0x97   :  { %94 = vst.msk [vmem:[#allocation0] sm:$0x1] %vm93_vm15, %v92_v40   ;;  %vm189_vm15 = vcmask 64544  }
  0x9c   :  { %v98_v50 = vpop.permute.xlu0 %97   ;;  %v104_v51 = vpop.permute.xlu1 %103  }
  0x9d   :  { %100 = vst.msk [vmem:[#allocation0] sm:$0x1] %vm99_vm0, %v98_v50   ;;  %v164_v52 = vpop.permute.xlu2 %163  }
  0x9e   :  { %106 = vst.msk [vmem:[#allocation0] sm:$0x1] %vm105_vm1, %v104_v51  }
  0x9f   :  { %112 = vst.msk [vmem:[#allocation0] sm:$0x1] %vm111_vm2, %v110_v43  }
  0xa4   :  { %v116_v53 = vpop.permute.xlu0 %115   ;;  %v122_v54 = vpop.permute.xlu1 %121  }
  0xa5   :  { %118 = vst.msk [vmem:[#allocation0] sm:$0x1] %vm117_vm3, %v116_v53   ;;  %v182_v55 = vpop.permute.xlu2 %181  }
  0xa6   :  { %124 = vst.msk [vmem:[#allocation0] sm:$0x1] %vm123_vm4, %v122_v54  }
  0xa7   :  { %130 = vst.msk [vmem:[#allocation0] sm:$0x1] %vm129_vm5, %v128_v46  }
  0xac   :  { %v134_v56 = vpop.permute.xlu0 %133   ;;  %v140_v57 = vpop.permute.xlu1 %139  }
  0xad   :  { %136 = vst.msk [vmem:[#allocation0] sm:$0x1] %vm135_vm6, %v134_v56  }
  0xae   :  { %142 = vst.msk [vmem:[#allocation0] sm:$0x1] %vm141_vm7, %v140_v57  }
  0xaf   :  { %148 = vst.msk [vmem:[#allocation0] sm:$0x1] %vm147_vm8, %v146_v49  }
  0xb4   :  { %v152_v58 = vpop.permute.xlu0 %151   ;;  %v158_v59 = vpop.permute.xlu1 %157  }
  0xb5   :  { %154 = vst.msk [vmem:[#allocation0] sm:$0x1] %vm153_vm9, %v152_v58  }
  0xb6   :  { %160 = vst.msk [vmem:[#allocation0] sm:$0x1] %vm159_vm10, %v158_v59  }
  0xb7   :  { %166 = vst.msk [vmem:[#allocation0] sm:$0x1] %vm165_vm11, %v164_v52  }
  0xbc   :  { %v170_v60 = vpop.permute.xlu0 %169   ;;  %v176_v61 = vpop.permute.xlu1 %175  }
  0xbd   :  { %172 = vst.msk [vmem:[#allocation0] sm:$0x1] %vm171_vm12, %v170_v60  }
  0xbe   :  { %178 = vst.msk [vmem:[#allocation0] sm:$0x1] %vm177_vm13, %v176_v61  }
  0xbf   :  { %184 = vst.msk [vmem:[#allocation0] sm:$0x1] %vm183_vm14, %v182_v55  }
  0xc4   :  { %v188_v62 = vpop.permute.xlu0 %187  }
  0xc5   :  { %190 = vst.msk [vmem:[#allocation0] sm:$0x1] %vm189_vm15, %v188_v62  }
  0xcc   :  { %v193_v63 = vld [vmem:[#allocation0] sm:$0x1] }
  0xcd   :  { %196 = vst [vmem:[%s400_s1] sm:$0x1] %v193_v63 }

// kernel: tile.13
= control target key start
LH: loop header
LB: loop body
LE: loop exit
PB: predicated region body
PF: predicated region fallthrough
CT: control target
= control target key end

     0   :  { %s40_s0 = inlined_call_operand.vmem [shape: f32[4], index: 0, kind: input, shape index: {}]   ;;  %s41_s1 = inlined_call_operand.vmem [shape: f32[32,4], index: 1, kind: output, shape index: {}]  }
   0x1   :  { %v4_v0 = vld [vmem:[%s40_s0] ss:$0 sm:$0xff] }
   0x2   :  { %5 = vst [vmem:[%s41_s1] sm:$0xff] %v4_v0 }
   0x3   :  { %12 = vst [vmem:[%s41_s1 + $0x8] sm:$0xff] %v4_v0 }
   0x4   :  { %13 = vst [vmem:[%s41_s1 + $0x10] sm:$0xff] %v4_v0 }
   0x5   :  { %14 = vst [vmem:[%s41_s1 + $0x18] sm:$0xff] %v4_v0 }

// kernel: _forward_impl.1
= control target key start
LH: loop header
LB: loop body
LE: loop exit
PB: predicated region body
PF: predicated region fallthrough
CT: control target
= control target key end

     0   :  { %s1682_s30 = smov 0   ;;  %s2203_s0 = inlined_call_operand.vmem [shape: f32[16,128], index: 0, kind: input, shape index: {}]   ;;  %s2204_s1 = inlined_call_operand.vmem [shape: f32[16,32], index: 1, kind: input, shape index: {}]   ;;  %s2205_s2 = inlined_call_operand.vmem [shape: bf16[64,4], index: 2, kind: input, shape index: {}]   ;;  %s2206_s3 = inlined_call_operand.vmem [shape: bf16[16,16], index: 3, kind: input, shape index: {}]   ;;  %s2207_s4 = inlined_call_operand.vmem [shape: f32[1,128], index: 4, kind: input, shape index: {}]   ;;  %s2208_s5 = inlined_call_operand.vmem [shape: f32[1,128], index: 5, kind: input, shape index: {}]   ;;  %s2209_s6 = inlined_call_operand.vmem [shape: f32[1,4], index: 6, kind: input, shape index: {}]   ;;  %s2210_s7 = inlined_call_operand.vmem [shape: f32[1,4], index: 7, kind: input, shape index: {}]   ;;  %s2211_s8 = inlined_call_operand.vmem [shape: f32[16,128], index: 8, kind: output, shape index: {0}]   ;;  %s2212_s9 = inlined_call_operand.vmem [shape: f32[16,32], index: 9, kind: output, shape index: {1}]  }
   0x1 LB: > { %s1383_s10 = sadd.s32 4294967295, %s1610_s30   ;;  %p1387_p0 = scmp.ge.s32.totalorder %s1610_s30, 1  ;;  %s1610_s30 = sphi %s1682_s30, %s20_s30  }
   0x2   : > { %p298_p1 = scmp.lt.s32.totalorder %s1610_s30, 3 }
   0x4   : > { %p299_p2 = pnand %p1387_p0, %p298_p1 }
   0x5   : > { %p340_p3 = scmp.lt.s32.totalorder (!%p299_p2), %s1383_s10, 1  ;;  %s1612_s19 = smov (!%p299_p2), 120  }
   0x6   : > { %302 = sbr.rel (%p299_p2) target bundleno = 1166 (0x48e), region = 52  ;;  %s1613_s20 = smov (!%p299_p2), 96  }
   0x7   : > { %s1614_s21 = smov (!%p299_p2), 112   ;;  %s1615_s22 = smov (!%p299_p2), 104  }
   0x8   : > { %s1616_s23 = smov (!%p299_p2), 88   ;;  %s1617_s24 = smov (!%p299_p2), 80  }
   0x9   : > { %s1618_s25 = smov (!%p299_p2), 72   ;;  %s1620_s26 = smov (!%p299_p2), 16  }
   0xa   : > { %s1621_s27 = smov (!%p299_p2), 32   ;;  %s1622_s28 = smov (!%p299_p2), 48  }
   0xb   : > { %s2238_s10 = smov (!%p340_p3, %s1383_s10), 1  ;;  %v1600_v0 = vld [vmem:[%s2207_s4] ss:$0 sm:$0xff]  ;;  %v421_v14 = vlaneseq  ;;  %vm412_vm0 = vcmask 64512   ;;  %vm570_vm2 = vcmask 1040384   ;;  %v1619_v32 = vmov 0.0  }
   0xc   : > { %s1693_s13 = sshll.u32 %s2238_s10, 3  ;;  %v1601_v1 = vld [vmem:[%s2208_s5] ss:$0 sm:$0xff]  ;;  %v1425_v24 = vld [vmem:[%s2205_s2 + $0x18] sm:$0xff]  ;;  %vm742_vm9 = vcmask 130048   ;;  %vm751_vm11 = vcmask 261120  }
   0xd   : > { %s343_s16 = scalar_lea.vmem %s2203_s0, %s1693_s13  ;;  %v1711_v16 = vshrl.u32 %v421_v14, 7  ;;  %822 = vmatpush.bf16.msra.mxu0 %v1425_v24  ;;  %1427 = vmatpush.bf16.msra.mxu2 %v1425_v24  ;;  %vm760_vm12 = vcmask 392192   ;;  %vm805_vm13 = vcmask 523264   ;;  %vm966_vm14 = vcmask 1046528   ;;  %s1626_s11 = smov 40  }
   0xe   : > { %v1702_v2 = vld [vmem:[%s343_s16] sm:$0xff]  ;;  %s1627_s12 = smov 24   ;;  %s1629_s14 = smov 56  }
   0xf   : > { %v362_v3 = vmul.f32 %v1600_v0, %v1702_v2  ;;  %v1714_v17 = vadd.s32 8, %v1711_v16  ;;  %v441_v18 = vand.u32 7, %v1711_v16  ;;  %v1727_v25 = vadd.s32 32, %v1711_v16  ;;  %s1630_s15 = smov 28   ;;  %s347_s16 = scalar_lea.vmem %s2204_s1, %s1693_s13 }
  0x10   : > { %v1730_v26 = vadd.s32 40, %v1711_v16  ;;  %v1777_v52 = vadd.s32 16, %v1711_v16  ;;  %v1780_v53 = vadd.s32 24, %v1711_v16 }
  0x11   : > { %v367_v4 = vadd.f32 %v1601_v1, %v362_v3  ;;  %v448_v20 = vand.u32 7, %v1714_v17  ;;  %vm1722_vm1 = vcmp.ne.s32.totalorder %v441_v18, 0  ;;  %v469_v39 = vand.u32 7, %v1727_v25 }
  0x12   : > { %v476_v43 = vand.u32 7, %v1730_v26 }
  0x13   : > { %v368_v5 = vmax.f32 %v367_v4, 0.0  ;;  %vm1745_vm3 = vcmp.ne.s32.totalorder %v448_v20, 0  ;;  %vm1772_vm4 = vcmp.ne.s32.totalorder %v469_v39, 0  ;;  %v455_v4 = vand.u32 7, %v1777_v52 }
  0x14   : > { %vm1790_vm5 = vcmp.ne.s32.totalorder %v476_v43, 0 }
  0x15   : > { %370 = vrot.lane.b32.xlu0 %v368_v5, %s1612_s19  ;;  %379 = vrot.lane.b32.xlu1 %v368_v5, %s1613_s20  ;;  %vm535_vm6 = vcmp.ne.s32.totalorder %v455_v4, 0  ;;  %s355_s20 = scalar_lea.vmem %s2212_s9, %s1693_s13 }
  0x16   : > { %373 = vrot.lane.b32.xlu2 %v368_v5, %s1614_s21 }
  0x1d   : > { %376 = vrot.lane.b32.xlu0 %v368_v5, %s1615_s22  ;;  %382 = vrot.lane.b32.xlu1 %v368_v5, %s1616_s23  ;;  %s1623_s23 = smov 4  }
  0x1e   : > { %385 = vrot.lane.b32.xlu2 %v368_v5, %s1617_s24  ;;  %s1624_s24 = smov 12  }
  0x70   : > { %v374_v9 = vpop.permute.xlu2 %373 }
  0x78   : > { %v1709_v15 = vpop.permute.xlu2 %385 }
  0x87   : > { %v371_v6 = vpop.permute.xlu0 %370  ;;  %v380_v7 = vpop.permute.xlu1 %379 }
  0x88   : > { %v1460_v8 = vpack.i.bf16 %v371_v6, %v368_v5 }
  0x8a   : > { %1461 = vrot.lane.b32.xlu0 %v1460_v8, %s1618_s25  ;;  %v462_v8 = vand.u32 7, %v1780_v53 }
  0x8c   : > { %vm536_vm7 = vcmp.ne.s32.totalorder %v462_v8, 0  ;;  %vm1980_vm15 = vcmp.ne.s32.totalorder %v462_v8, 7 }
  0x8f   : > { %v377_v10 = vpop.permute.xlu0 %376  ;;  %v383_v11 = vpop.permute.xlu1 %382 }
  0x90   : > { %v1465_v12 = vpack.i.bf16 %v380_v7, %v377_v10  ;;  %v1470_v13 = vpack.i.bf16 %v374_v9, %v383_v11 }
  0x92   : > { %1466 = vrot.lane.b32.xlu1 %v1465_v12, %s1618_s25  ;;  %1471 = vrot.lane.b32.xlu2 %v1470_v13, %s1618_s25 }
  0xec   : > { %v1472_v23 = vpop.permute.xlu2 %1471 }
  0xed   : > { %v1473_v27 = vunpack.i.l.bf16 %v1472_v23  ;;  %v1474_v36 = vunpack.i.h.bf16 %v1472_v23 }
  0xef   : > { %v1756_v40 = vsel %vm412_vm0, %v383_v11, %v1473_v27  ;;  %v1766_v47 = vsel %vm412_vm0, %v374_v9, %v1474_v36  ;;  %v1424_v27 = vld [vmem:[%s2205_s2 + $0x10] sm:$0xff] }
  0xf0   : > { %v580_v50 = vrot.slane %v1756_v40, 7  ;;  %v574_v58 = vrot.slane %v1766_v47, 7  ;;  %823 = vmatpush.bf16.msra.mxu0 %v1424_v27  ;;  %1428 = vmatpush.bf16.msra.mxu2 %v1424_v27 }
  0xfc   : > { %v1462_v19 = vpop.permute.xlu0 %1461 }
  0xfd   : > { %v1464_v21 = vunpack.i.h.bf16 %v1462_v19  ;;  %v1718_v22 = vunpack.i.l.bf16 %v1462_v19 }
  0xff   : > { %v1733_v28 = vsel %vm412_vm0, %v371_v6, %v1464_v21  ;;  %v1475_v29 = vpack.i.bf16 %v1718_v22, %v1709_v15  ;;  %v1739_v30 = vsel %vm412_vm0, %v368_v5, %v1718_v22 }
 0x100   : > { %v572_v31 = vrot.slane %v1733_v28, 7  ;;  %v1480_v33 = vpack.i.bf16 %v1739_v30, %v1619_v32  ;;  %v571_v35 = vrot.slane %v1739_v30, 7 }
 0x101   : > { %1476 = vrot.lane.b32.xlu0 %v1475_v29, %s1618_s25  ;;  %v1423_v29 = vld [vmem:[%s2205_s2 + $0x8] sm:$0xff]  ;;  %s1625_s25 = smov 8  }
 0x102   : > { %1481 = vrot.lane.b32.xlu1 %v1480_v33, %s1620_s26  ;;  %v573_v37 = vsel %vm570_vm2, %v571_v35, %v572_v31  ;;  %v594_v38 = vsel %vm570_vm2, 0.0, %v571_v35  ;;  %v575_v11 = vsel %vm570_vm2, %v572_v31, %v574_v58  ;;  %824 = vmatpush.bf16.msra.mxu0 %v1423_v29  ;;  %v1422_v31 = vld [vmem:[%s2205_s2] sm:$0xff]  ;;  %v1847_v33 = vadd.s32 56, %v1711_v16 }
 0x103   : > { %v611_v41 = vsel %vm1722_vm1, %v594_v38, 0.0  ;;  %v612_v42 = vsel %vm1745_vm3, %v573_v37, 0.0  ;;  %v640_v46 = vsel %vm1745_vm3, %v594_v38, 0.0  ;;  %v613_v13 = vsel %vm535_vm6, %v575_v11, 0.0  ;;  %1429 = vmatpush.bf16.msra.mxu2 %v1423_v29 }
 0x104   : > { %v1467_v44 = vpop.permute.xlu1 %1466  ;;  %v1500_v45 = vpack.i.bf16 %v612_v42, %v611_v41  ;;  %v1485_v54 = vpack.i.bf16 %v640_v46, %v1619_v32  ;;  %v641_v19 = vsel %vm535_vm6, %v573_v37, 0.0  ;;  %v642_v21 = vsel %vm536_vm7, %v575_v11, 0.0 }
 0x105   : > { %v1469_v48 = vunpack.i.h.bf16 %v1467_v44  ;;  %v1468_v49 = vunpack.i.l.bf16 %v1467_v44  ;;  %v1520_v23 = vpack.i.bf16 %v642_v21, %v641_v19  ;;  %v1844_v32 = vadd.s32 48, %v1711_v16 }
 0x106   : > { %1501 = vrot.lane.b32.xlu2 %v1500_v45, %s1621_s27  ;;  %825 = vmatpush.bf16.msra.mxu0 %v1422_v31  ;;  %v490_v42 = vand.u32 7, %v1847_v33  ;;  %vm931_vm1 = vcmp.ne.s32.totalorder %v455_v4, 7  ;;  %vm2003_vm3 = vcmp.ne.s32.totalorder %v448_v20, 7 }
 0x107   : > { %v1783_v55 = vsel %vm412_vm0, %v377_v10, %v1468_v49  ;;  %v1786_v56 = vsel %vm412_vm0, %v380_v7, %v1469_v48  ;;  %v1495_v10 = vpack.i.bf16 %v1766_v47, %v1733_v28  ;;  %1430 = vmatpush.bf16.msra.mxu2 %v1422_v31  ;;  %v483_v34 = vand.u32 7, %v1844_v32 }
 0x108   : > { %v578_v59 = vrot.slane %v1786_v56, 7  ;;  %v1490_v60 = vpack.i.bf16 %v1786_v56, %v1783_v55  ;;  %v576_v61 = vrot.slane %v1783_v55, 7  ;;  %vm1871_vm10 = vcmp.ne.s32.totalorder %v490_v42, 0 }
 0x109   : > { %1486 = vrot.lane.b32.xlu0 %v1485_v54, %s1622_s28  ;;  %vm1853_vm8 = vcmp.ne.s32.totalorder %v483_v34, 0  ;;  %vm2071_vm6 = vcmp.ne.s32.totalorder %v483_v34, 7 }
 0x10a   : > { %1491 = vrot.lane.b32.xlu1 %v1490_v60, %s1620_s26  ;;  %v579_v62 = vsel %vm570_vm2, %v576_v61, %v578_v59  ;;  %v1805_v63 = vsel %vm570_vm2, %v578_v59, %v580_v50  ;;  %v577_v0 = vsel %vm570_vm2, %v574_v58, %v576_v61 }
 0x10b   : > { %v615_v1 = vsel %vm1772_vm4, %v579_v62, 0.0  ;;  %v616_v3 = vsel %vm1790_vm5, %v1805_v63, 0.0  ;;  %v643_v6 = vsel %vm1772_vm4, %v577_v0, 0.0  ;;  %v644_v7 = vsel %vm1790_vm5, %v579_v62, 0.0 }
 0x10c   : > { %v1505_v5 = vpack.i.bf16 %v616_v3, %v615_v1  ;;  %v1510_v9 = vpack.i.bf16 %v644_v7, %v643_v6  ;;  %v614_v12 = vsel %vm536_vm7, %v577_v0, 0.0  ;;  %vm2038_vm4 = vcmp.ne.s32.totalorder %v469_v39, 7 }
 0x10d   : > { %v1515_v14 = vpack.i.bf16 %v614_v12, %v613_v13  ;;  %vm2044_vm5 = vcmp.ne.s32.totalorder %v476_v43, 7  ;;  %vm936_vm7 = vcmp.ne.s32.totalorder %v490_v42, 7 }
 0x10e   : > { %1506 = vrot.lane.b32.xlu2 %v1505_v5, %s1621_s27 }
 0x111   : > { %1511 = vrot.lane.b32.xlu0 %v1510_v9, %s1622_s28 }
 0x112   : > { %1496 = vrot.lane.b32.xlu1 %v1495_v10, %s1620_s26 }
 0x116   : > { %1516 = vrot.lane.b32.xlu2 %v1515_v14, %s1621_s27 }
 0x119   : > { %1521 = vrot.lane.b32.xlu0 %v1520_v23, %s1622_s28 }
 0x160   : > { %v1502_v36 = vpop.permute.xlu2 %1501 }
 0x161   : > { %v1503_v0 = vunpack.i.l.bf16 %v1502_v36 }
 0x168   : > { %v1507_v11 = vpop.permute.xlu2 %1506 }
 0x169   : > { %v1509_v27 = vunpack.i.h.bf16 %v1507_v11  ;;  %v1508_v29 = vunpack.i.l.bf16 %v1507_v11 }
 0x173   : > { %v1477_v35 = vpop.permute.xlu0 %1476 }
 0x174   : > { %v1479_v37 = vunpack.i.h.bf16 %v1477_v35  ;;  %v1478_v38 = vunpack.i.l.bf16 %v1477_v35  ;;  %v1482_v41 = vpop.permute.xlu1 %1481 }
 0x175   : > { %v1484_v46 = vunpack.i.h.bf16 %v1482_v41  ;;  %v1483_v48 = vunpack.i.l.bf16 %v1482_v41 }
 0x176   : > { %v1859_v45 = vsel %vm412_vm0, %v1718_v22, %v1479_v37  ;;  %v1863_v49 = vsel %vm412_vm0, %v1709_v15, %v1478_v38  ;;  %v1504_v22 = vunpack.i.h.bf16 %v1502_v36  ;;  %v645_v15 = vsel %vm1853_vm8, %v1805_v63, 0.0 }
 0x177   : > { %v584_v51 = vrot.slane %v1859_v45, 7  ;;  %v1525_v54 = vpack.i.bf16 %v1863_v49, %v1756_v40  ;;  %v582_v57 = vrot.slane %v1863_v49, 7  ;;  %v744_v59 = vsel %vm742_vm9, %v1733_v28, %v1484_v46 }
 0x178   : > { %v743_v60 = vsel %vm742_vm9, %v1739_v30, %v1483_v48  ;;  %v753_v10 = vsel %vm751_vm11, %v744_v59, %v1504_v22 }
 0x179   : > { %1526 = vrot.lane.b32.xlu1 %v1525_v54, %s1620_s26  ;;  %v583_v61 = vsel %vm570_vm2, %v580_v50, %v582_v57  ;;  %v585_v62 = vsel %vm570_vm2, %v582_v57, %v584_v51  ;;  %v752_v50 = vsel %vm751_vm11, %v743_v60, %v1503_v0  ;;  %v1517_v54 = vpop.permute.xlu2 %1516  ;;  %vm1997_vm2 = vcmp.ne.s32.totalorder %v441_v18, 7 }
 0x17a   : > { %v646_v3 = vsel %vm1871_vm10, %v583_v61, 0.0  ;;  %v617_v63 = vsel %vm1853_vm8, %v583_v61, 0.0  ;;  %v618_v28 = vsel %vm1871_vm10, %v585_v62, 0.0  ;;  %v1519_v58 = vunpack.i.h.bf16 %v1517_v54 }
 0x17b   : > { %v1487_v1 = vpop.permute.xlu0 %1486  ;;  %v1535_v7 = vpack.i.bf16 %v646_v3, %v645_v15  ;;  %v1530_v9 = vpack.i.bf16 %v618_v28, %v617_v63  ;;  %v1518_v22 = vunpack.i.l.bf16 %v1517_v54  ;;  %vm875_vm8 = vcmask 31744  }
 0x17c   : > { %v1489_v5 = vunpack.i.h.bf16 %v1487_v1  ;;  %v1488_v6 = vunpack.i.l.bf16 %v1487_v1  ;;  %v1492_v30 = vpop.permute.xlu1 %1491  ;;  %vm878_vm10 = vcmask 97280  }
 0x17d   : > { %v1494_v12 = vunpack.i.h.bf16 %v1492_v30  ;;  %v1493_v13 = vunpack.i.l.bf16 %v1492_v30  ;;  %1536 = vrot.lane.b32.xlu0 %v1535_v7, %s1622_s28  ;;  %1531 = vrot.lane.b32.xlu2 %v1530_v9, %s1621_s27 }
 0x17e   : > { %v761_v14 = vsel %vm760_vm12, %v752_v50, %v1488_v6  ;;  %v762_v19 = vsel %vm760_vm12, %v753_v10, %v1489_v5 }
 0x17f   : > { %v769_v21 = vpack.c.bf16 %v762_v19, %v761_v14  ;;  %v748_v23 = vsel %vm742_vm9, %v1756_v40, %v1494_v12  ;;  %v747_v24 = vsel %vm742_vm9, %v1786_v56, %v1493_v13 }
 0x180   : > { %v756_v38 = vsel %vm751_vm11, %v747_v24, %v1508_v29  ;;  %v757_v41 = vsel %vm751_vm11, %v748_v23, %v1509_v27  ;;  %v1945_v29 = vld [vmem:[%s2210_s7] ss:$0 sm:$0xff] }
 0x181   : > { %1408 = vmatmul.msk.bf16.vlgmr.msra.gmra.mxu0 %vm805_vm13, %v769_v21 }
 0x183   : > { %v1512_v31 = vpop.permute.xlu0 %1511 }
 0x184   : > { %v1514_v35 = vunpack.i.h.bf16 %v1512_v31  ;;  %v1513_v36 = vunpack.i.l.bf16 %v1512_v31  ;;  %v1497_v37 = vpop.permute.xlu1 %1496 }
 0x185   : > { %v1499_v44 = vunpack.i.h.bf16 %v1497_v37  ;;  %v1498_v46 = vunpack.i.l.bf16 %v1497_v37 }
 0x186   : > { %v765_v48 = vsel %vm760_vm12, %v756_v38, %v1513_v36  ;;  %v766_v51 = vsel %vm760_vm12, %v757_v41, %v1514_v35 }
 0x187   : > { %v771_v40 = vpack.c.bf16 %v766_v51, %v765_v48  ;;  %v746_v56 = vsel %vm742_vm9, %v1783_v55, %v1499_v44  ;;  %v745_v57 = vsel %vm742_vm9, %v1766_v47, %v1498_v46 }
 0x188   : > { %v754_v61 = vsel %vm751_vm11, %v745_v57, %v1518_v22  ;;  %v755_v62 = vsel %vm751_vm11, %v746_v56, %v1519_v58 }
 0x189   : > { %1410 = vmatmul.msk.bf16.vlgmr.msra.gmra.mxu2 %vm805_vm13, %v771_v40 }
 0x18b   : > { %v1522_v15 = vpop.permute.xlu0 %1521 }
 0x18c   : > { %v1524_v59 = vunpack.i.h.bf16 %v1522_v15  ;;  %v1523_v60 = vunpack.i.l.bf16 %v1522_v15 }
 0x18e   : > { %v763_v0 = vsel %vm760_vm12, %v754_v61, %v1523_v60  ;;  %v764_v1 = vsel %vm760_vm12, %v755_v62, %v1524_v59 }
 0x18f   : > { %v770_v3 = vpack.c.bf16 %v764_v1, %v763_v0 }
 0x191   : > { %1409 = vmatmul.msk.bf16.gmra.mxu0 %vm805_vm13, %v770_v3 }
 0x1d7   : > { %v1532_v47 = vpop.permute.xlu2 %1531 }
 0x1d8   : > { %v1534_v30 = vunpack.i.h.bf16 %v1532_v47  ;;  %v1533_v7 = vunpack.i.l.bf16 %v1532_v47 }
 0x1eb   : > { %v1527_v55 = vpop.permute.xlu1 %1526 }
 0x1ec   : > { %v1529_v63 = vunpack.i.h.bf16 %v1527_v55  ;;  %v1528_v28 = vunpack.i.l.bf16 %v1527_v55 }
 0x1ee   : > { %v750_v5 = vsel %vm742_vm9, %v1859_v45, %v1529_v63  ;;  %v749_v6 = vsel %vm742_vm9, %v1863_v49, %v1528_v28  ;;  %v1934_v49 = vld [vmem:[%s2209_s6] ss:$0 sm:$0xff] }
 0x1ef   : > { %v1537_v9 = vpop.permute.xlu0 %1536  ;;  %v758_v11 = vsel %vm751_vm11, %v749_v6, %v1533_v7  ;;  %v759_v12 = vsel %vm751_vm11, %v750_v5, %v1534_v30  ;;  %v1426_v30 = vld [vmem:[%s2206_s3] sm:$0xff] }
 0x1f0   : > { %v1539_v50 = vunpack.i.h.bf16 %v1537_v9  ;;  %v1538_v10 = vunpack.i.l.bf16 %v1537_v9  ;;  %1431 = vmatpush.bf16.msra.mxu3 %v1426_v30  ;;  %1192 = vmatpush.bf16.msra.mxu1 %v1426_v30 }
 0x1f2   : > { %v767_v13 = vsel %vm760_vm12, %v758_v11, %v1538_v10  ;;  %v768_v14 = vsel %vm760_vm12, %v759_v12, %v1539_v50 }
 0x1f3   : > { %v772_v19 = vpack.c.bf16 %v768_v14, %v767_v13 }
 0x1f5   : > { %1411 = vmatmul.msk.bf16.gmra.mxu2 %vm805_vm13, %v772_v19 }
 0x1fe   : > { %v1927_v45 = vpop.f32.mrf.mxu0 }
 0x206   : > { %v1929_v21 = vpop.f32.mrf.mxu0 }
 0x207   : > { %v895_v24 = vmul.f32 %v1934_v49, %v1929_v21 }
 0x209   : > { %v907_v37 = vadd.f32 %v1945_v29, %v895_v24  ;;  %v894_v24 = vmul.f32 %v1934_v49, %v1927_v45 }
 0x20b   : > { %v1960_v48 = vmax.f32 %v907_v37, 0.0 }
 0x20c   : > { %v1936_v23 = vpop.f32.mrf.mxu2 }
 0x20d   : > { %v898_v31 = vmul.f32 %v1934_v49, %v1936_v23  ;;  %v968_v15 = vrot.slane %v1960_v48, 1 }
 0x20e   : > { %v1940_v27 = vpop.f32.mrf.mxu0 }
 0x20f   : > { %v896_v35 = vmul.f32 %v1934_v49, %v1940_v27  ;;  %v910_v38 = vadd.f32 %v1945_v29, %v898_v31 }
 0x211   : > { %v908_v36 = vadd.f32 %v1945_v29, %v896_v35  ;;  %v1964_v40 = vmax.f32 %v910_v38, 0.0 }
 0x213   : > { %v1954_v41 = vmax.f32 %v908_v36, 0.0  ;;  %v974_v59 = vrot.slane %v1964_v40, 1  ;;  %v2062_v36 = vadd.f32 %v1945_v29, %v894_v24 }
 0x214   : > { %v1956_v44 = vpop.f32.mrf.mxu2 }
 0x215   : > { %v899_v46 = vmul.f32 %v1934_v49, %v1956_v44  ;;  %v970_v57 = vrot.slane %v1954_v41, 1 }
 0x216   : > { %v1962_v51 = vpop.f32.mrf.mxu0 }
 0x217   : > { %v911_v54 = vadd.f32 %v1945_v29, %v899_v46  ;;  %v897_v56 = vmul.f32 %v1934_v49, %v1962_v51  ;;  %v1987_v0 = vsel %vm966_vm14, %v968_v15, %v970_v57 }
 0x218   : > { %v1036_v18 = vsel %vm1997_vm2, %v1987_v0, 0.0 }
 0x219   : > { %v1970_v58 = vmax.f32 %v911_v54, 0.0  ;;  %v909_v22 = vadd.f32 %v1945_v29, %v897_v56 }
 0x21b   : > { %v976_v60 = vrot.slane %v1970_v58, 1  ;;  %v1976_v61 = vmax.f32 %v909_v22, 0.0 }
 0x21d   : > { %v972_v1 = vrot.slane %v1976_v61, 1  ;;  %v1540_v3 = vpack.i.bf16 %v1964_v40, %v1976_v61  ;;  %v977_v55 = vsel %vm966_vm14, %v974_v59, %v976_v60 }
 0x21e   : > { %v1039_v4 = vsel %vm1980_vm15, %v977_v55, 0.0  ;;  %v1011_v39 = vsel %vm2038_vm4, %v977_v55, 0.0  ;;  %v1008_v55 = vsel %vm2003_vm3, %v1987_v0, 0.0 }
 0x21f   : > { %1541 = vrot.lane.b32.xlu1 %v1540_v3, %s1623_s23  ;;  %v975_v52 = vsel %vm966_vm14, %v972_v1, %v974_v59  ;;  %v973_v16 = vsel %vm966_vm14, %v970_v57, %v972_v1 }
 0x220   : > { %v1038_v63 = vsel %vm931_vm1, %v975_v52, 0.0  ;;  %v1009_v17 = vsel %vm931_vm1, %v973_v16, 0.0  ;;  %v1010_v20 = vsel %vm1980_vm15, %v975_v52, 0.0  ;;  %v1037_v28 = vsel %vm2003_vm3, %v973_v16, 0.0 }
 0x221   : > { %v1550_v47 = vpack.i.bf16 %v1039_v4, %v1038_v63  ;;  %v1545_v5 = vpack.i.bf16 %v1010_v20, %v1009_v17  ;;  %v2019_v6 = vpack.i.bf16 %v1037_v28, %v1036_v18  ;;  %vm1246_vm15 = vcmask 326656  }
 0x222   : > { %vm1249_vm1 = vcmask 457728   ;;  %vm885_vm3 = vcmask 228352  }
 0x223   : > { %1551 = vrot.lane.b32.xlu0 %v1550_v47, %s1624_s24  ;;  %1546 = vrot.lane.b32.xlu2 %v1545_v5, %s1625_s25 }
 0x278   : > { %v2026_v7 = vpop.f32.mrf.mxu2 }
 0x279   : > { %v900_v9 = vmul.f32 %v1934_v49, %v2026_v7 }
 0x27b   : > { %v912_v50 = vadd.f32 %v1945_v29, %v900_v9 }
 0x27d   : > { %v2031_v10 = vmax.f32 %v912_v50, 0.0  ;;  %v1547_v52 = vpop.permute.xlu2 %1546 }
 0x27e   : > { %v1549_v28 = vunpack.i.h.bf16 %v1547_v52  ;;  %v1548_v47 = vunpack.i.l.bf16 %v1547_v52 }
 0x27f   : > { %v978_v11 = vrot.slane %v2031_v10, 1  ;;  %v1555_v12 = vpack.i.bf16 %v2031_v10, %v1970_v58 }
 0x280   : > { %v2048_v19 = vpop.f32.mrf.mxu2 }
 0x281   : > { %v901_v31 = vmul.f32 %v1934_v49, %v2048_v19  ;;  %1556 = vrot.lane.b32.xlu1 %v1555_v12, %s1623_s23  ;;  %v979_v25 = vsel %vm966_vm14, %v976_v60, %v978_v11  ;;  %v1575_v60 = vpack.i.bf16 %v1954_v41, %v1960_v48 }
 0x282   : > { %v1012_v26 = vsel %vm2044_vm5, %v979_v25, 0.0  ;;  %v1040_v57 = vsel %vm2038_vm4, %v979_v25, 0.0 }
 0x283   : > { %v913_v43 = vadd.f32 %v1945_v29, %v901_v31  ;;  %v1560_v35 = vpack.i.bf16 %v1012_v26, %v1011_v39  ;;  %v914_v29 = vmax.f32 %v2062_v36, 0.0 }
 0x285   : > { %v2064_v37 = vmax.f32 %v913_v43, 0.0  ;;  %1561 = vrot.lane.b32.xlu2 %v1560_v35, %s1625_s25  ;;  %v967_v59 = vrot.slane %v914_v29, 1 }
 0x287   : > { %v980_v49 = vrot.slane %v2064_v37, 1  ;;  %v1570_v38 = vpack.i.bf16 0.0, %v2064_v37  ;;  %v969_v62 = vsel %vm966_vm14, %v967_v59, %v968_v15 }
 0x288   : > { %v1007_v18 = vsel %vm1997_vm2, %v969_v62, 0.0  ;;  %vm881_vm2 = vcmask 162816  }
 0x289   : > { %1571 = vrot.lane.b32.xlu1 %v1570_v38, %s1623_s23  ;;  %v981_v54 = vsel %vm966_vm14, %v978_v11, %v980_v49  ;;  %v990_v56 = vsel %vm966_vm14, %v980_v49, 0.0  ;;  %v1585_v20 = vpack.i.bf16 %v1008_v55, %v1007_v18  ;;  %vm883_vm14 = vcmask 195584  }
 0x28a   : > { %v1041_v32 = vsel %vm2044_vm5, %v981_v54, 0.0  ;;  %v1013_v34 = vsel %vm2071_vm6, %v981_v54, 0.0  ;;  %v1014_v22 = vsel %vm936_vm7, %v990_v56, 0.0  ;;  %v1042_v3 = vsel %vm2071_vm6, %v990_v56, 0.0 }
 0x28b   : > { %v1565_v33 = vpack.i.bf16 %v1041_v32, %v1040_v57  ;;  %v1580_v42 = vpack.i.bf16 %v1014_v22, %v1013_v34  ;;  %v1590_v17 = vpack.i.bf16 0.0, %v1042_v3 }
 0x28d   : > { %1566 = vrot.lane.b32.xlu0 %v1565_v33, %s1624_s24  ;;  %1581 = vrot.lane.b32.xlu2 %v1580_v42, %s1625_s25 }
 0x291   : > { %v1542_v1 = vpop.permute.xlu1 %1541  ;;  %1576 = vrot.lane.b32.xlu1 %v1575_v60, %s1623_s23 }
 0x292   : > { %v1544_v4 = vunpack.i.h.bf16 %v1542_v1  ;;  %v1543_v16 = vunpack.i.l.bf16 %v1542_v1 }
 0x294   : > { %v1140_v15 = vsel %vm875_vm8, %v1976_v61, %v1544_v4  ;;  %v1139_v63 = vsel %vm875_vm8, %v1954_v41, %v1543_v16 }
 0x295   : > { %v1552_v8 = vpop.permute.xlu0 %1551  ;;  %1591 = vrot.lane.b32.xlu0 %v1590_v17, %s1624_s24  ;;  %1586 = vrot.lane.b32.xlu2 %v1585_v20, %s1625_s25  ;;  %v1147_v53 = vsel %vm412_vm0, %v1139_v63, %v1548_v47  ;;  %v1148_v30 = vsel %vm412_vm0, %v1140_v15, %v1549_v28 }
 0x296   : > { %v1554_v0 = vunpack.i.h.bf16 %v1552_v8  ;;  %v1553_v5 = vunpack.i.l.bf16 %v1552_v8 }
 0x298   : > { %v1155_v61 = vsel %vm878_vm10, %v1147_v53, %v1553_v5  ;;  %v1156_v41 = vsel %vm878_vm10, %v1148_v30, %v1554_v0 }
 0x299   : > { %v1162_v9 = vpack.c.bf16 %v1156_v41, %v1155_v61 }
 0x29b   : > { %1417 = vmatmul.msk.bf16.vlgmr.msra.gmra.mxu3 %vm742_vm9, %v1162_v9 }
 0x29d   : > { %1596 = vrot.lane.b32.xlu0 %v2019_v6, %s1624_s24 }
 0x2df   : > { %v1562_v11 = vpop.permute.xlu2 %1561 }
 0x2e0   : > { %v1564_v25 = vunpack.i.h.bf16 %v1562_v11  ;;  %v1563_v39 = vunpack.i.l.bf16 %v1562_v11 }
 0x2e7   : > { %v1582_v38 = vpop.permute.xlu2 %1581 }
 0x2e8   : > { %v1584_v1 = vunpack.i.h.bf16 %v1582_v38  ;;  %v1583_v3 = vunpack.i.l.bf16 %v1582_v38 }
 0x2ef   : > { %v1587_v33 = vpop.permute.xlu2 %1586 }
 0x2f0   : > { %v1589_v4 = vunpack.i.h.bf16 %v1587_v33  ;;  %v1588_v16 = vunpack.i.l.bf16 %v1587_v33 }
 0x2f3   : > { %v1557_v50 = vpop.permute.xlu1 %1556 }
 0x2f4   : > { %v1559_v12 = vunpack.i.h.bf16 %v1557_v50  ;;  %v1558_v13 = vunpack.i.l.bf16 %v1557_v50 }
 0x2f6   : > { %v1142_v24 = vsel %vm875_vm8, %v1970_v58, %v1559_v12  ;;  %v1141_v31 = vsel %vm875_vm8, %v1964_v40, %v1558_v13 }
 0x2f7   : > { %v1149_v49 = vsel %vm412_vm0, %v1141_v31, %v1563_v39  ;;  %v1150_v6 = vsel %vm412_vm0, %v1142_v24, %v1564_v25 }
 0x2fb   : > { %v1572_v14 = vpop.permute.xlu1 %1571 }
 0x2fc   : > { %v1574_v40 = vunpack.i.h.bf16 %v1572_v14  ;;  %v1573_v32 = vunpack.i.l.bf16 %v1572_v14 }
 0x2fe   : > { %v1144_v42 = vsel %vm875_vm8, %v2064_v37, %v1574_v40  ;;  %v1143_v59 = vsel %vm875_vm8, %v2031_v10, %v1573_v32 }
 0x2ff   : > { %v1567_v26 = vpop.permute.xlu0 %1566  ;;  %v1151_v15 = vsel %vm412_vm0, %v1143_v59, %v1583_v3  ;;  %v1152_v37 = vsel %vm412_vm0, %v1144_v42, %v1584_v1 }
 0x300   : > { %v1569_v43 = vunpack.i.h.bf16 %v1567_v26  ;;  %v1568_v35 = vunpack.i.l.bf16 %v1567_v26 }
 0x302   : > { %v1157_v46 = vsel %vm878_vm10, %v1149_v49, %v1568_v35  ;;  %v1158_v54 = vsel %vm878_vm10, %v1150_v6, %v1569_v43 }
 0x303   : > { %v1163_v56 = vpack.c.bf16 %v1158_v54, %v1157_v46  ;;  %v1577_v58 = vpop.permute.xlu1 %1576 }
 0x304   : > { %v1579_v34 = vunpack.i.h.bf16 %v1577_v58  ;;  %v1578_v22 = vunpack.i.l.bf16 %v1577_v58 }
 0x305   : > { %1418 = vmatmul.msk.bf16.gmra.mxu3 %vm742_vm9, %v1163_v56 }
 0x306   : > { %v1138_v55 = vsel %vm875_vm8, %v1960_v48, %v1579_v34  ;;  %v1137_v52 = vsel %vm875_vm8, %v914_v29, %v1578_v22 }
 0x307   : > { %v1592_v57 = vpop.permute.xlu0 %1591  ;;  %v1145_v28 = vsel %vm412_vm0, %v1137_v52, %v1588_v16  ;;  %v1146_v48 = vsel %vm412_vm0, %v1138_v55, %v1589_v4  ;;  %v887_v55 = vld [vmem:[%s347_s16] sm:$0xff] }
 0x308   : > { %v1594_v60 = vunpack.i.h.bf16 %v1592_v57  ;;  %v1593_v62 = vunpack.i.l.bf16 %v1592_v57 }
 0x30a   : > { %v1159_v17 = vsel %vm878_vm10, %v1151_v15, %v1593_v62  ;;  %v1160_v20 = vsel %vm878_vm10, %v1152_v37, %v1594_v60 }
 0x30b   : > { %v1164_v8 = vpack.c.bf16 %v1160_v20, %v1159_v17 }
 0x30f   : > { %v1597_v18 = vpop.permute.xlu0 %1596 }
 0x310   : > { %v1599_v63 = vunpack.i.h.bf16 %v1597_v18  ;;  %v1598_v10 = vunpack.i.l.bf16 %v1597_v18 }
 0x312   : > { %v1153_v36 = vsel %vm878_vm10, %v1145_v28, %v1598_v10  ;;  %v1154_v29 = vsel %vm878_vm10, %v1146_v48, %v1599_v63 }
 0x313   : > { %v1161_v47 = vpack.c.bf16 %v1154_v29, %v1153_v36 }
 0x315   : > { %1416 = vmatmul.msk.bf16.vlgmr.msra.gmra.mxu1 %vm742_vm9, %v1161_v47  ;;  %1419 = vmatmul.msk.bf16.gmra.mxu3 %vm742_vm9, %v1164_v8 }
 0x31e   : > { %v1199_v0 = vpop.f32.mrf.mxu3 }
 0x31f   : > { %1255 = vrot.lane.b32.xlu2 %v1199_v0, %s1625_s25 }
 0x326   : > { %v1201_v5 = vpop.f32.mrf.mxu3 }
 0x327   : > { %1258 = vrot.lane.b32.xlu0 %v1201_v5, %s1620_s26 }
 0x388   : > { %v1204_v53 = vpop.f32.mrf.mxu3 }
 0x390   : > { %v1206_v30 = vpop.f32.mrf.mxu3 }
 0x391   : > { %1264 = vrot.lane.b32.xlu2 %v1206_v30, %s1621_s27 }
 0x392   : > { %v1194_v61 = vpop.f32.mrf.mxu1 }
 0x393   : > { %1252 = vrot.lane.b32.xlu1 %v1194_v61, %s1612_s19  ;;  %s1628_s19 = smov 20  }
 0x398   : > { %v1209_v41 = vpop.f32.mrf.mxu3 }
 0x399   : > { %1267 = vrot.lane.b32.xlu0 %v1209_v41, %s1626_s11  ;;  %v1259_v11 = vpop.permute.xlu0 %1258 }
 0x39a   : > { %v1196_v9 = vpop.f32.mrf.mxu1 }
 0x39b   : > { %1261 = vrot.lane.b32.xlu1 %v1204_v53, %s1627_s12  ;;  %1215 = vrot.lane.b32.xlu2 %v1196_v9, %s1625_s25 }
 0x3a0   : > { %v1211_v50 = vpop.f32.mrf.mxu3 }
 0x3a1   : > { %848 = vrot.lane.b32.xlu0 %v1929_v21, %s1623_s23  ;;  %v1256_v21 = vpop.permute.xlu2 %1255  ;;  %s351_s23 = scalar_lea.vmem %s2211_s8, %s1693_s13 }
 0x3a3   : > { %852 = vrot.lane.b32.xlu2 %v1940_v27, %s1625_s25  ;;  %1270 = vrot.lane.b32.xlu1 %v1211_v50, %s1622_s28 }
 0x3a9   : > { %1223 = vrot.lane.b32.xlu0 %v1201_v5, %s1627_s12 }
 0x3ab   : > { %1227 = vrot.lane.b32.xlu2 %v1204_v53, %s1621_s27  ;;  %1219 = vrot.lane.b32.xlu1 %v1199_v0, %s1620_s26 }
 0x3b1   : > { %860 = vrot.lane.b32.xlu0 %v1936_v23, %s1620_s26  ;;  %s1631_s26 = smov 64  }
 0x3b3   : > { %864 = vrot.lane.b32.xlu2 %v1956_v44, %s1628_s19  ;;  %856 = vrot.lane.b32.xlu1 %v1962_v51, %s1624_s24 }
 0x3b9   : > { %1235 = vrot.lane.b32.xlu0 %v1209_v41, %s1622_s28 }
 0x3bb   : > { %1239 = vrot.lane.b32.xlu2 %v1211_v50, %s1629_s14  ;;  %1231 = vrot.lane.b32.xlu1 %v1206_v30, %s1626_s11 }
 0x3c1   : > { %872 = vrot.lane.b32.xlu0 %v2048_v19, %s1630_s15 }
 0x3c3   : > { %868 = vrot.lane.b32.xlu1 %v2026_v7, %s1627_s12 }
 0x3eb   : > { %v1265_v27 = vpop.permute.xlu2 %1264 }
 0x3f5   : > { %v1216_v12 = vpop.permute.xlu2 %1215 }
 0x3f6   : > { %v1242_v6 = vsel %vm412_vm0, %v1194_v61, %v1216_v12 }
 0x3fd   : > { %v853_v19 = vpop.permute.xlu2 %852 }
 0x405   : > { %v1253_v23 = vpop.permute.xlu1 %1252  ;;  %v1228_v35 = vpop.permute.xlu2 %1227 }
 0x406   : > { %v1273_v44 = vsel %vm412_vm0, %v1253_v23, %v1196_v9 }
 0x407   : > { %v1274_v13 = vsel %vm742_vm9, %v1273_v44, %v1256_v21 }
 0x408   : > { %v1275_v24 = vsel %vm883_vm14, %v1274_v13, %v1259_v11 }
 0x40b   : > { %v1268_v51 = vpop.permute.xlu0 %1267 }
 0x40d   : > { %v1262_v14 = vpop.permute.xlu1 %1261  ;;  %v865_v57 = vpop.permute.xlu2 %864 }
 0x40e   : > { %v1276_v31 = vsel %vm751_vm11, %v1275_v24, %v1262_v14 }
 0x40f   : > { %v1277_v7 = vsel %vm1246_vm15, %v1276_v31, %v1265_v27 }
 0x410   : > { %v1278_v26 = vsel %vm760_vm12, %v1277_v7, %v1268_v51 }
 0x413   : > { %v849_v25 = vpop.permute.xlu0 %848 }
 0x414   : > { %v876_v32 = vsel %vm875_vm8, %v1927_v45, %v849_v25 }
 0x415   : > { %v1271_v39 = vpop.permute.xlu1 %1270  ;;  %v877_v33 = vsel %vm412_vm0, %v876_v32, %v853_v19  ;;  %v1240_v59 = vpop.permute.xlu2 %1239 }
 0x416   : > { %v1279_v43 = vsel %vm1249_vm1, %v1278_v26, %v1271_v39 }
 0x417   : > { %1281 = vrot.lane.b32.xlu1 %v1279_v43, %s1631_s26 }
 0x41b   : > { %v1224_v49 = vpop.permute.xlu0 %1223 }
 0x41d   : > { %v1220_v38 = vpop.permute.xlu1 %1219 }
 0x41e   : > { %v1243_v46 = vsel %vm742_vm9, %v1242_v6, %v1220_v38 }
 0x41f   : > { %v1244_v54 = vsel %vm883_vm14, %v1243_v46, %v1224_v49 }
 0x420   : > { %v1245_v56 = vsel %vm751_vm11, %v1244_v54, %v1228_v35 }
 0x423   : > { %v861_v58 = vpop.permute.xlu0 %860 }
 0x425   : > { %v857_v40 = vpop.permute.xlu1 %856 }
 0x426   : > { %v879_v60 = vsel %vm878_vm10, %v877_v33, %v857_v40 }
 0x427   : > { %v880_v3 = vsel %vm742_vm9, %v879_v60, %v861_v58 }
 0x428   : > { %v882_v45 = vsel %vm881_vm2, %v880_v3, %v865_v57 }
 0x42b   : > { %v1236_v34 = vpop.permute.xlu0 %1235 }
 0x42d   : > { %v1232_v22 = vpop.permute.xlu1 %1231 }
 0x42e   : > { %v1247_v42 = vsel %vm1246_vm15, %v1245_v56, %v1232_v22 }
 0x42f   : > { %v1248_v62 = vsel %vm760_vm12, %v1247_v42, %v1236_v34 }
 0x430   : > { %v1250_v1 = vsel %vm1249_vm1, %v1248_v62, %v1240_v59 }
 0x433   : > { %v873_v4 = vpop.permute.xlu0 %872 }
 0x435   : > { %v869_v52 = vpop.permute.xlu1 %868 }
 0x436   : > { %v884_v16 = vsel %vm883_vm14, %v882_v45, %v869_v52 }
 0x437   : > { %v886_v18 = vsel %vm885_vm3, %v884_v16, %v873_v4 }
 0x438   : > { %v888_v15 = vadd.f32 %v887_v55, %v886_v18 }
 0x43a   : > { %889 = vst.msk [vmem:[%s355_s20] sm:$0xff] %vm751_vm11, %v888_v15 }
 0x489   : > { %v1282_v37 = vpop.permute.xlu1 %1281 }
 0x48a   : > { %v1284_v63 = vsel %vm805_vm13, %v1250_v1, %v1282_v37 }
 0x48b   : > { %v1285_v10 = vadd.f32 %v1284_v63, %v1702_v2 }
 0x48d   : > { %1286 = vst [vmem:[%s351_s23] sm:$0xff] %v1285_v10 }
 0x48e PF: > { %s20_s30 = sadd.s32 1, %s1610_s30  }
 0x48f   : > { %p17_p4 = scmp.ge.s32.totalorder %s20_s30, 4  }
 0x491   :  { %19 = sbr.rel (!%p17_p4) target bundleno = 1 (0x1), region = 97 }

</bundles_post_ra>
